<compile_context>
chip_gen: v5e
topology: v5e:2x2
jax: 0.10.0
libtpu: 0.0.40
codegen_flags: <defaults>
</compile_context>

<pallas_src>
import functools

import jax
import jax.numpy as jnp
from jax.experimental import pallas as pl
from jax.experimental.pallas import tpu as pltpu

BN_EPS = 1e-5
LRELU_SLOPE = 0.01            # PyTorch nn.LeakyReLU default
LANE = 128
SUBLANE = 8


def _round_up(x, m):
    return ((x + m - 1) // m) * m


_VMEM_LIMIT_CACHE = None


def _vmem_limit():
    """Per-generation scoped-VMEM limit (v7x: 32 MiB, v5e/v6e: 64 MiB)."""
    global _VMEM_LIMIT_CACHE
    if _VMEM_LIMIT_CACHE is None:
        limit = 32 * 1024 * 1024
        try:
            cap = int(pltpu.get_tpu_info().vmem_capacity_bytes)
            limit = int(min(cap // 2, 96 * 1024 * 1024))
        except Exception:
            pass
        _VMEM_LIMIT_CACHE = limit
    return _VMEM_LIMIT_CACHE


# ---------------------------------------------------------------------------
# Pallas kernel bodies
# ---------------------------------------------------------------------------
def _conv_kernel(shifts, apply_bn, has_bias, act, emit_stats, *refs):
    """Fused [BN+LeakyReLU on input] -> k-tap conv matmul -> [bias/2*tanh]
    -> bf16 store, plus per-block column sum / sum-of-squares for the next
    BatchNorm.  One grid step = one batch element; taps are in-kernel shifted
    copies of the loaded channels-last tile (zero rows at the seq boundary)."""
    idx = 0
    x_ref = refs[idx]; idx += 1
    w_refs = refs[idx: idx + len(shifts)]; idx += len(shifts)
    if apply_bn:
        sc_ref = refs[idx]; sh_ref = refs[idx + 1]; idx += 2
    if has_bias:
        b_ref = refs[idx]; idx += 1
    y_ref = refs[idx]; idx += 1
    if emit_stats:
        s_ref = refs[idx]; q_ref = refs[idx + 1]

    if apply_bn:
        g = x_ref[0].astype(jnp.float32)
        gn = g * sc_ref[...] + sh_ref[...]
        g = jnp.where(gn >= 0.0, gn, LRELU_SLOPE * gn)
        gb = g.astype(jnp.bfloat16)
    else:
        gb = x_ref[0].astype(jnp.bfloat16)

    zero_row = jnp.zeros((1, gb.shape[1]), jnp.bfloat16)

    acc = None
    for shift, w_ref in zip(shifts, w_refs):
        if shift == 0:
            lhs = gb
        elif shift == 1:        # row m reads row m-1 (zero at the top)
            lhs = jnp.concatenate([zero_row, gb[:-1, :]], axis=0)
        else:                   # row m reads row m+1 (zero at the bottom)
            lhs = jnp.concatenate([gb[1:, :], zero_row], axis=0)
        term = jnp.dot(lhs, w_ref[...], preferred_element_type=jnp.float32)
        acc = term if acc is None else acc + term

    if has_bias:
        acc = acc + b_ref[...]
    if act == "tanh2":
        acc = 2.0 * jnp.tanh(acc)     # final Conv1d + Tanh, incl. the "2 *"

    y_ref[0] = acc.astype(y_ref.dtype)
    if emit_stats:
        s_ref[...] = jnp.broadcast_to(
            jnp.sum(acc, axis=0, keepdims=True), s_ref.shape)
        q_ref[...] = jnp.broadcast_to(
            jnp.sum(acc * acc, axis=0, keepdims=True), q_ref.shape)


def _linear_kernel(apply_bn, act, *refs):
    """[BN+LeakyReLU on LHS] -> matmul -> +bias -> [2*tanh] -> store."""
    idx = 0
    x_ref = refs[idx]; idx += 1
    w_ref = refs[idx]; idx += 1
    if apply_bn:
        sc_ref = refs[idx]; sh_ref = refs[idx + 1]; idx += 2
    b_ref = refs[idx]; idx += 1
    o_ref = refs[idx]

    x = x_ref[...].astype(jnp.float32)
    if apply_bn:
        xn = x * sc_ref[...] + sh_ref[...]
        x = jnp.where(xn >= 0.0, xn, LRELU_SLOPE * xn)
    y = jnp.dot(x.astype(jnp.bfloat16), w_ref[...],
                preferred_element_type=jnp.float32) + b_ref[...]
    if act == "tanh2":
        y = 2.0 * jnp.tanh(y)
    o_ref[...] = y.astype(o_ref.dtype)


# ---------------------------------------------------------------------------
# pallas_call wrappers
# ---------------------------------------------------------------------------
def conv_block(x, weights, shifts, *, scale_row=None, shift_row=None,
               bias_row=None, act=None, emit_stats=False,
               out_dtype=jnp.bfloat16):
    """x: (N, Lg, Kg) channels-last; weights[i]: (Kg, out_cols) bf16."""
    n, lg, kg = x.shape
    out_cols = weights[0].shape[1]
    apply_bn = scale_row is not None
    has_bias = bias_row is not None

    inputs = [x] + list(weights)
    in_specs = [pl.BlockSpec((1, lg, kg), lambda b: (b, 0, 0))]
    in_specs += [pl.BlockSpec((kg, out_cols), lambda b: (0, 0))
                 for _ in weights]
    if apply_bn:
        inputs += [scale_row, shift_row]
        in_specs += [pl.BlockSpec((1, kg), lambda b: (0, 0))] * 2
    if has_bias:
        inputs += [bias_row]
        in_specs += [pl.BlockSpec((1, out_cols), lambda b: (0, 0))]

    out_shape = [jax.ShapeDtypeStruct((n, lg, out_cols), out_dtype)]
    out_specs = [pl.BlockSpec((1, lg, out_cols), lambda b: (b, 0, 0))]
    if emit_stats:
        out_shape += [jax.ShapeDtypeStruct((n * SUBLANE, out_cols),
                                           jnp.float32)] * 2
        out_specs += [pl.BlockSpec((SUBLANE, out_cols), lambda b: (b, 0))] * 2

    y_bytes = n * lg * out_cols * (2 if out_dtype == jnp.bfloat16 else 4)
    flops = 2 * n * lg * kg * out_cols * len(shifts)
    trans = n * lg * out_cols if act == "tanh2" else 0
    bytes_acc = int(x.size * x.dtype.itemsize
                    + sum(int(w.size) * 2 for w in weights)
                    + y_bytes
                    + (2 * n * SUBLANE * out_cols * 4 if emit_stats else 0))

    kernel = functools.partial(_conv_kernel, tuple(shifts), apply_bn,
                               has_bias, act, emit_stats)
    res = pl.pallas_call(
        kernel,
        out_shape=out_shape,
        grid_spec=pltpu.PrefetchScalarGridSpec(
            num_scalar_prefetch=0,
            grid=(n,),
            in_specs=in_specs,
            out_specs=out_specs),
        compiler_params=pltpu.CompilerParams(
            dimension_semantics=("parallel",),
            vmem_limit_bytes=_vmem_limit()),
        cost_estimate=pl.CostEstimate(flops=flops, transcendentals=trans,
                                      bytes_accessed=bytes_acc),
    )(*inputs)
    if emit_stats:
        return res[0], res[1], res[2]
    return res[0]


def linear(x, w, b, *, scale_row=None, shift_row=None, act=None,
           out_dtype=jnp.float32):
    """x: (M, K), w: (K, Ncols) bf16, b: (1, Ncols) f32.  Single block."""
    m, k = x.shape
    kw, ncols = w.shape
    apply_bn = scale_row is not None

    inputs = [x, w]
    in_specs = [pl.BlockSpec((m, k), lambda i: (0, 0)),
                pl.BlockSpec((kw, ncols), lambda i: (0, 0))]
    if apply_bn:
        inputs += [scale_row, shift_row]
        in_specs += [pl.BlockSpec((1, k), lambda i: (0, 0))] * 2
    inputs.append(b)
    in_specs.append(pl.BlockSpec((1, ncols), lambda i: (0, 0)))

    kernel = functools.partial(_linear_kernel, apply_bn, act)
    bytes_acc = int(x.size * x.dtype.itemsize + int(w.size) * 2
                    + m * ncols * 4)
    out = pl.pallas_call(
        kernel,
        out_shape=[jax.ShapeDtypeStruct((m, ncols), out_dtype)],
        grid_spec=pltpu.PrefetchScalarGridSpec(
            num_scalar_prefetch=0,
            grid=(1,),
            in_specs=in_specs,
            out_specs=[pl.BlockSpec((m, ncols), lambda i: (0, 0))]),
        compiler_params=pltpu.CompilerParams(
            dimension_semantics=("arbitrary",),
            vmem_limit_bytes=_vmem_limit()),
        cost_estimate=pl.CostEstimate(flops=2 * m * k * ncols,
                                      transcendentals=0,
                                      bytes_accessed=bytes_acc),
    )(*inputs)
    return out[0]


# ---------------------------------------------------------------------------
# BatchNorm stat folding (tiny per-channel XLA math between kernels)
# ---------------------------------------------------------------------------
def _bn_scale_shift(s_c, q_c, count, gamma, beta, pad_to):
    mean = s_c / count
    var = jnp.maximum(q_c / count - mean * mean, 0.0)   # clamp (review concern)
    scale = gamma * jax.lax.rsqrt(var + BN_EPS)
    shift = beta - mean * scale
    c = gamma.shape[0]
    return (jnp.pad(scale, (0, pad_to - c)),
            jnp.pad(shift, (0, pad_to - c)))


# ---------------------------------------------------------------------------
# Layer wrappers (weights already in matmul form, see init_params)
# ---------------------------------------------------------------------------
def encoder_conv_layer(h, prev_ss, layer):
    """Conv1d(k=3, s=2, p=1) [bias dropped] with the previous layer's
    BN+LeakyReLU fused into the LHS; returns raw output + this layer's BN."""
    n, l, w = h.shape
    grouped = h.reshape(n, l // 2, 2 * w)          # free channels-last reshape
    if prev_ss is not None:
        sc_row = jnp.tile(prev_ss[0], 2)[None, :]
        sh_row = jnp.tile(prev_ss[1], 2)[None, :]
    else:
        sc_row = sh_row = None
    out_pad = layer["w_main"].shape[1]
    c_out = layer["gamma"].shape[0]
    y, s, q = conv_block(grouped, [layer["w_main"], layer["w_shift"]],
                         shifts=(0, 1), scale_row=sc_row, shift_row=sh_row,
                         emit_stats=True, out_dtype=jnp.bfloat16)
    s_tot = jnp.sum(s.reshape(n, SUBLANE, out_pad)[:, 0, :], axis=0)
    q_tot = jnp.sum(q.reshape(n, SUBLANE, out_pad)[:, 0, :], axis=0)
    count = n * (l // 2)
    ss = _bn_scale_shift(s_tot[:c_out], q_tot[:c_out], count,
                         layer["gamma"], layer["beta"], out_pad)
    return y, ss


def convT_layer(h, prev_ss, layer):
    """ConvTranspose1d(k=3, s=2, p=1, op=1) [bias dropped], polyphase form."""
    n, l, w = h.shape
    if prev_ss is not None:
        sc_row, sh_row = prev_ss[0][None, :], prev_ss[1][None, :]
    else:
        sc_row = sh_row = None
    out_cols = layer["w_main"].shape[1]
    out_pad = out_cols // 2
    c_out = layer["gamma"].shape[0]
    y, s, q = conv_block(h, [layer["w_main"], layer["w_shift"]],
                         shifts=(0, -1), scale_row=sc_row, shift_row=sh_row,
                         emit_stats=True, out_dtype=jnp.bfloat16)
    s_tot = jnp.sum(s.reshape(n, SUBLANE, out_cols)[:, 0, :], axis=0)
    q_tot = jnp.sum(q.reshape(n, SUBLANE, out_cols)[:, 0, :], axis=0)
    s_c = s_tot[:c_out] + s_tot[out_pad:out_pad + c_out]
    q_c = q_tot[:c_out] + q_tot[out_pad:out_pad + c_out]
    count = n * l * 2
    ss = _bn_scale_shift(s_c, q_c, count, layer["gamma"], layer["beta"],
                         out_pad)
    h_out = y.reshape(n, 2 * l, out_pad)           # free even/odd interleave
    return h_out, ss


def final_conv_layer(h, prev_ss, layer):
    """Conv1d(k=3, s=1, p=1) + bias + 2*tanh, previous BN+LReLU fused."""
    sc_row, sh_row = prev_ss[0][None, :], prev_ss[1][None, :]
    return conv_block(h, [layer["w1"], layer["w0"], layer["w2"]],
                      shifts=(0, 1, -1), scale_row=sc_row, shift_row=sh_row,
                      bias_row=layer["b"], act="tanh2", emit_stats=False,
                      out_dtype=jnp.float32)


def run_encoder(enc_params, x_nlc):
    """Returns the encoder's RAW last matmul output (pre-BN) plus the last
    layer's BN scale/shift, to be fused into whichever kernel consumes it."""
    h, ss = x_nlc, None
    for layer in enc_params:
        h, ss = encoder_conv_layer(h, ss, layer)
    return h, ss


# ---------------------------------------------------------------------------
# Weight preparation (torch-shaped weights -> matmul form, bf16, padded)
# ---------------------------------------------------------------------------
def _enc_conv_weights(w_t, in_width, out_pad):
    """torch Conv1d weight (C_out, C_in, 3) -> polyphase pair for the grouped
    (pairs-of-positions) channels-last input of stored width `in_width`."""
    c_out, c_in, _ = w_t.shape

    def tap(k):
        m = jnp.transpose(w_t[:, :, k])                       # (C_in, C_out)
        return jnp.pad(m, ((0, in_width - c_in), (0, out_pad - c_out)))

    zeros = jnp.zeros((in_width, out_pad), jnp.float32)
    w_main = jnp.concatenate([tap(1), tap(2)], axis=0)        # x[2m], x[2m+1]
    w_shift = jnp.concatenate([zeros, tap(0)], axis=0)        # x[2m-1]
    return w_main.astype(jnp.bfloat16), w_shift.astype(jnp.bfloat16)


def _convT_weights(w_t, row_blocks, out_pad):
    """torch ConvTranspose1d weight (C_in, C_out, 3) -> polyphase pair.
    Output cols [0:out_pad] = even positions, [out_pad:2*out_pad] = odd."""
    _, c_out, _ = w_t.shape

    def place(mat):                                           # (C_in, C_out)
        parts = [jnp.pad(mat[s:s + sz], ((0, p - sz), (0, 0)))
                 for s, sz, p in row_blocks]
        m = jnp.concatenate(parts, axis=0)
        return jnp.pad(m, ((0, 0), (0, out_pad - c_out)))

    k_rows = sum(p for _, _, p in row_blocks)
    zeros = jnp.zeros((k_rows, out_pad), jnp.float32)
    w_main = jnp.concatenate([place(w_t[:, :, 1]), place(w_t[:, :, 2])],
                             axis=1)
    w_shift = jnp.concatenate([zeros, place(w_t[:, :, 0])], axis=1)
    return w_main.astype(jnp.bfloat16), w_shift.astype(jnp.bfloat16)


def _final_conv_weights(w_t, in_width):
    """torch Conv1d weight (C_out, C_in, 3) -> three per-tap matrices."""
    c_out, c_in, _ = w_t.shape

    def tap(k):
        m = jnp.transpose(w_t[:, :, k])
        return jnp.pad(m, ((0, in_width - c_in), (0, 0))).astype(jnp.bfloat16)

    return tap(0), tap(1), tap(2)


# ---------------------------------------------------------------------------
# Parameter construction (deterministic, synthetic)
# ---------------------------------------------------------------------------
def init_params(key, in_channels, latent_dim, input_len, hidden_dims):
    keys = iter(jax.random.split(key, 128))
    scl = 0.05

    def nrm(shape):
        return scl * jax.random.normal(next(keys), shape, jnp.float32)

    def c_pad(c):
        return _round_up(c, LANE)

    end_len = input_len // (2 ** len(hidden_dims))
    last_hidden = hidden_dims[-1]
    cfg = dict(in_channels=in_channels, latent_dim=latent_dim,
               input_len=input_len, hidden_dims=list(hidden_dims),
               last_hidden=last_hidden, end_len=end_len,
               c_pad_last=c_pad(last_hidden))

    # --- encoder convs -----------------------------------------------------
    enc = []
    in_width, c_in = in_channels, in_channels
    for h in hidden_dims:
        w_t = nrm((h, c_in, 3))
        w_main, w_shift = _enc_conv_weights(w_t, in_width, c_pad(h))
        enc.append(dict(w_main=w_main, w_shift=w_shift,
                        gamma=jnp.ones((h,), jnp.float32),
                        beta=jnp.zeros((h,), jnp.float32)))
        c_in, in_width = h, c_pad(h)

    # --- fc_mu / fc_var fused; rows permuted to the channels-last flatten ---
    feat = last_hidden * end_len
    ncols = _round_up(2 * latent_dim, LANE)
    w_cat = jnp.concatenate([nrm((feat, latent_dim)), nrm((feat, latent_dim))],
                            axis=1)
    w3 = w_cat.reshape(last_hidden, end_len, 2 * latent_dim).transpose(1, 0, 2)
    w3 = jnp.pad(w3, ((0, 0), (0, c_pad(last_hidden) - last_hidden), (0, 0)))
    w_fc = jnp.pad(w3.reshape(end_len * c_pad(last_hidden), 2 * latent_dim),
                   ((0, 0), (0, ncols - 2 * latent_dim))).astype(jnp.bfloat16)
    b_fc = jnp.pad(jnp.concatenate([nrm((latent_dim,)), nrm((latent_dim,))]),
                   (0, ncols - 2 * latent_dim))[None, :].astype(jnp.float32)
    fc = dict(w=w_fc, b=b_fc)

    # --- decoder_input; columns permuted to channels-last (l-major) order ---
    w_di, b_di = nrm((latent_dim, feat)), nrm((feat,))
    w3 = w_di.reshape(latent_dim, last_hidden, end_len).transpose(0, 2, 1)
    w3 = jnp.pad(w3, ((0, 0), (0, 0), (0, c_pad(last_hidden) - last_hidden)))
    w_din = w3.reshape(latent_dim, end_len * c_pad(last_hidden)).astype(
        jnp.bfloat16)
    b3 = jnp.pad(b_di.reshape(last_hidden, end_len).T,
                 ((0, 0), (0, c_pad(last_hidden) - last_hidden)))
    b_din = b3.reshape(1, end_len * c_pad(last_hidden)).astype(jnp.float32)
    dec_in = dict(w=w_din, b=b_din)

    # --- decoder ConvT chain -------------------------------------------------
    rev = list(reversed(hidden_dims))
    dec = []
    for i in range(len(rev) - 1):
        ci, co = 2 * rev[i], 2 * rev[i + 1]
        w_t = nrm((ci, co, 3))
        if i == 0:   # input is cat([decoder_input result, encoder output])
            blocks = [(0, rev[0], c_pad(rev[0])),
                      (rev[0], rev[0], c_pad(rev[0]))]
        else:
            blocks = [(0, ci, c_pad(ci))]
        w_main, w_shift = _convT_weights(w_t, blocks, c_pad(co))
        dec.append(dict(w_main=w_main, w_shift=w_shift,
                        gamma=jnp.ones((co,), jnp.float32),
                        beta=jnp.zeros((co,), jnp.float32)))

    # --- final layer: ConvT + BN + LReLU, then Conv1d + Tanh ----------------
    cf = 2 * rev[-1]
    w_t = nrm((cf, cf, 3))
    if len(rev) == 1:
        blocks_f = [(0, rev[0], c_pad(rev[0])), (rev[0], rev[0], c_pad(rev[0]))]
    else:
        blocks_f = [(0, cf, c_pad(cf))]
    w_main, w_shift = _convT_weights(w_t, blocks_f, c_pad(cf))
    final_ct = dict(w_main=w_main, w_shift=w_shift,
                    gamma=jnp.ones((cf,), jnp.float32),
                    beta=jnp.zeros((cf,), jnp.float32))

    w_t = nrm((in_channels, cf, 3))
    w0, w1, w2 = _final_conv_weights(w_t, c_pad(cf))
    final_conv = dict(w0=w0, w1=w1, w2=w2,
                      b=nrm((in_channels,))[None, :].astype(jnp.float32))

    params = dict(enc=enc, fc=fc, dec_in=dec_in, dec=dec,
                  final_ct=final_ct, final_conv=final_conv)
    return params, cfg


# ---------------------------------------------------------------------------
# Model forward (structure mirrors the PyTorch module)
# ---------------------------------------------------------------------------
def encode(params, cfg, x_nlc):
    n = x_nlc.shape[0]
    h, (sc, sh) = run_encoder(params["enc"], x_nlc)
    flat = h.reshape(n, -1)                           # channels-last flatten
    sc_row = jnp.tile(sc, cfg["end_len"])[None, :]    # BN of enc last layer,
    sh_row = jnp.tile(sh, cfg["end_len"])[None, :]    # fused into the fc LHS
    out = linear(flat, params["fc"]["w"], params["fc"]["b"],
                 scale_row=sc_row, shift_row=sh_row, out_dtype=jnp.float32)
    d = cfg["latent_dim"]
    return out[:, :d], out[:, d:2 * d]


def decode(params, cfg, z, shuffled_nlc):
    n = z.shape[0]
    r = linear(z, params["dec_in"]["w"], params["dec_in"]["b"],
               out_dtype=jnp.bfloat16)
    r = r.reshape(n, cfg["end_len"], cfg["c_pad_last"])

    h_enc, (sc, sh) = run_encoder(params["enc"], shuffled_nlc)
    enc_act = h_enc.astype(jnp.float32) * sc[None, None, :] + sh[None, None, :]
    enc_act = jnp.where(enc_act >= 0.0, enc_act,
                        LRELU_SLOPE * enc_act).astype(jnp.bfloat16)
    h = jnp.concatenate([r, enc_act], axis=-1)        # cat over channels

    ss = None                                         # r has no pre-activation
    for layer in params["dec"]:
        h, ss = convT_layer(h, ss, layer)
    h, ss = convT_layer(h, ss, params["final_ct"])
    y = final_conv_layer(h, ss, params["final_conv"])     # (N, L, C_in) f32
    return jnp.transpose(y, (0, 2, 1))                    # back to (N, C, L)


def shuffle_and_noise(x, rand_prob, key):
    # TODO(synk): the PyTorch forward hard-codes range(64)/randperm(1024) and
    # relies on ambiguous advanced-indexing assignment; we implement the clear
    # intent (per-batch-element partial permutation of sequence positions),
    # generalized to (B, C, L), in plain JAX.
    b, c, l = x.shape
    k_perm, k_gate, k_noise, k_drop = jax.random.split(key, 4)
    perm_keys = jax.random.split(k_perm, b)
    gate_keys = jax.random.split(k_gate, b)

    def per_item(xi, pk, gk, p):
        perm = jax.random.permutation(pk, l)
        gate = jax.random.uniform(gk, (l,)) < p
        mixed = jnp.where(gate, perm, jnp.arange(l))
        return xi[:, mixed]

    shuffled = jax.vmap(per_item)(x, perm_keys, gate_keys, rand_prob)
    rand_resized = jnp.broadcast_to(rand_prob[:, None, None], (b, c, l))
    shuffled = shuffled + jax.random.normal(k_noise, (b, c, l)) * (
        rand_resized * 0.01)
    drop = jax.random.uniform(k_drop, (b, c, l)) < rand_resized
    return jnp.where(drop, 0.0, shuffled)


def forward(params, cfg, x, rand_prob, key):
    k_eps, k_shuf = jax.random.split(key)
    x_nlc = jnp.transpose(x, (0, 2, 1))               # single layout change in
    mu, log_var = encode(params, cfg, x_nlc)
    std = jnp.exp(0.5 * log_var)
    eps = jax.random.normal(k_eps, mu.shape, jnp.float32)
    z = eps * std + mu
    shuffled = shuffle_and_noise(x, rand_prob, k_shuf)
    shuffled_nlc = jnp.transpose(shuffled, (0, 2, 1))
    recon = decode(params, cfg, z, shuffled_nlc)
    return recon, x, mu, log_var


# ---------------------------------------------------------------------------
if __name__ == "__main__":
    # Small shapes: batch=2, in_channels=4, input_len=16,
    # hidden_dims=[32, 64] -> end_conv_len = 16 // 2**2 = 4, latent_dim=8.
    B, C, L = 2, 4, 16
    HIDDEN = [32, 64]
    LATENT = 8

    root = jax.random.PRNGKey(0)
    k_param, k_x, k_prob, k_fwd = jax.random.split(root, 4)

    params, cfg = init_params(k_param, C, LATENT, L, HIDDEN)
    x = jax.random.normal(k_x, (B, C, L), jnp.float32)
    rand_prob = jax.random.uniform(k_prob, (B,), jnp.float32)

    fwd = jax.jit(lambda p, xx, rp, kk: forward(p, cfg, xx, rp, kk))
    recon, inp, mu, log_var = fwd(params, x, rand_prob, k_fwd)
    jax.block_until_ready((recon, mu, log_var))

    assert recon.shape == (B, C, L)
    assert mu.shape == (B, LATENT) and log_var.shape == (B, LATENT)
    assert bool(jnp.all(jnp.isfinite(recon)))
    assert bool(jnp.all(jnp.isfinite(mu))) and bool(jnp.all(jnp.isfinite(log_var)))
    print("KERNEL_OK")
</pallas_src>

<mosaic_0001>
module attributes {stable_mosaic.version = 11 : i64} {
  func.func @_conv_kernel(%arg0: i32, %arg1: memref<1x8x8xf32, #tpu.memory_space<vmem>>, %arg2: memref<8x128xbf16, #tpu.memory_space<vmem>>, %arg3: memref<8x128xbf16, #tpu.memory_space<vmem>>, %arg4: memref<1x8x128xbf16, #tpu.memory_space<vmem>>, %arg5: memref<8x128xf32, #tpu.memory_space<vmem>>, %arg6: memref<8x128xf32, #tpu.memory_space<vmem>>) attributes {dimension_semantics = [#tpu.dimension_semantics<parallel>], iteration_bounds = array<i64: 2>, scalar_prefetch = 0 : i64, scratch_operands = 0 : i64, tpu.core_type = #tpu.core_type<tc>, window_params = [{transform_indices = @transform_0, window_bounds = array<i64: 1, 8, 8>}, {pipeline_mode = #tpu.pipeline_mode<synchronous>, transform_indices = @transform_1, window_bounds = array<i64: 8, 128>}, {pipeline_mode = #tpu.pipeline_mode<synchronous>, transform_indices = @transform_2, window_bounds = array<i64: 8, 128>}, {transform_indices = @transform_3, window_bounds = array<i64: 1, 8, 128>}, {transform_indices = @transform_4, window_bounds = array<i64: 8, 128>}, {transform_indices = @transform_5, window_bounds = array<i64: 8, 128>}]} {
    %c0 = arith.constant 0 : index
    %c0_0 = arith.constant 0 : index
    %c0_1 = arith.constant 0 : index
    %0 = vector.load %arg1[%c0, %c0_0, %c0_1] : memref<1x8x8xf32, #tpu.memory_space<vmem>>, vector<1x8x8xf32>
    %1 = vector.shape_cast %0 : vector<1x8x8xf32> to vector<8x8xf32>
    %2 = arith.truncf %1 : vector<8x8xf32> to vector<8x8xbf16>
    %cst = arith.constant 0.000000e+00 : bf16
    %3 = vector.broadcast %cst : bf16 to vector<1x8xbf16>
    %c0_2 = arith.constant 0 : index
    %c0_3 = arith.constant 0 : index
    %4 = vector.load %arg2[%c0_2, %c0_3] : memref<8x128xbf16, #tpu.memory_space<vmem>>, vector<8x128xbf16>
    %cst_4 = arith.constant dense<0.000000e+00> : vector<8x128xf32>
    %5 = tpu.matmul %2, %4, %cst_4 {dimension_numbers = #tpu.dot_dimension_numbers<[1], [0], [0], [1], [0, 0, 1, 1], [], []>} : vector<8x8xbf16>, vector<8x128xbf16>, vector<8x128xf32> -> vector<8x128xf32>
    %6 = vector.extract_strided_slice %2 {offsets = [0, 0], sizes = [7, 8], strides = [1, 1]} : vector<8x8xbf16> to vector<7x8xbf16>
    %7 = tpu.concatenate %3, %6 in 0 : vector<1x8xbf16>, vector<7x8xbf16> -> vector<8x8xbf16>
    %c0_5 = arith.constant 0 : index
    %c0_6 = arith.constant 0 : index
    %8 = vector.load %arg3[%c0_5, %c0_6] : memref<8x128xbf16, #tpu.memory_space<vmem>>, vector<8x128xbf16>
    %cst_7 = arith.constant dense<0.000000e+00> : vector<8x128xf32>
    %9 = tpu.matmul %7, %8, %cst_7 {dimension_numbers = #tpu.dot_dimension_numbers<[1], [0], [0], [1], [0, 0, 1, 1], [], []>} : vector<8x8xbf16>, vector<8x128xbf16>, vector<8x128xf32> -> vector<8x128xf32>
    %10 = arith.addf %5, %9 : vector<8x128xf32>
    %11 = arith.truncf %10 : vector<8x128xf32> to vector<8x128xbf16>
    %c0_8 = arith.constant 0 : index
    %c0_9 = arith.constant 0 : index
    %c0_10 = arith.constant 0 : index
    %12 = vector.load %arg4[%c0_8, %c0_9, %c0_10] : memref<1x8x128xbf16, #tpu.memory_space<vmem>>, vector<1x8x128xbf16>
    %13 = vector.shape_cast %12 : vector<1x8x128xbf16> to vector<8x128xbf16>
    %14 = vector.shape_cast %11 : vector<8x128xbf16> to vector<1x8x128xbf16>
    tpu.vector_store %arg4[%c0_8, %c0_9, %c0_10], %14 {strides = array<i32>} : memref<1x8x128xbf16, #tpu.memory_space<vmem>>, vector<1x8x128xbf16>,
    %cst_11 = arith.constant dense<0.000000e+00> : vector<128xf32>
    %15 = vector.multi_reduction <add>, %10, %cst_11 [0] : vector<8x128xf32> to vector<128xf32>
    %16 = vector.shape_cast %15 : vector<128xf32> to vector<1x128xf32>
    %17 = vector.shape_cast %16 : vector<1x128xf32> to vector<1x128xf32>
    %18 = vector.broadcast %17 : vector<1x128xf32> to vector<8x128xf32>
    %c0_12 = arith.constant 0 : index
    %c0_13 = arith.constant 0 : index
    %19 = vector.load %arg5[%c0_12, %c0_13] : memref<8x128xf32, #tpu.memory_space<vmem>>, vector<8x128xf32>
    tpu.vector_store %arg5[%c0_12, %c0_13], %18 {strides = array<i32>} : memref<8x128xf32, #tpu.memory_space<vmem>>, vector<8x128xf32>,
    %20 = arith.mulf %10, %10 : vector<8x128xf32>
    %cst_14 = arith.constant dense<0.000000e+00> : vector<128xf32>
    %21 = vector.multi_reduction <add>, %20, %cst_14 [0] : vector<8x128xf32> to vector<128xf32>
    %22 = vector.shape_cast %21 : vector<128xf32> to vector<1x128xf32>
    %23 = vector.shape_cast %22 : vector<1x128xf32> to vector<1x128xf32>
    %24 = vector.broadcast %23 : vector<1x128xf32> to vector<8x128xf32>
    %c0_15 = arith.constant 0 : index
    %c0_16 = arith.constant 0 : index
    %25 = vector.load %arg6[%c0_15, %c0_16] : memref<8x128xf32, #tpu.memory_space<vmem>>, vector<8x128xf32>
    tpu.vector_store %arg6[%c0_15, %c0_16], %24 {strides = array<i32>} : memref<8x128xf32, #tpu.memory_space<vmem>>, vector<8x128xf32>,
    return
  }
  func.func @transform_0(%arg0: i32) -> (i32, i32, i32) {
    %c0_i32 = arith.constant 0 : i32
    %c0_i32_0 = arith.constant 0 : i32
    %c0_i32_1 = arith.constant 0 : i32
    return %arg0, %c0_i32, %c0_i32_0 : i32, i32, i32
  }
  func.func @transform_1(%arg0: i32) -> (i32, i32) {
    %c0_i32 = arith.constant 0 : i32
    %c0_i32_0 = arith.constant 0 : i32
    %c0_i32_1 = arith.constant 0 : i32
    return %c0_i32, %c0_i32_0 : i32, i32
  }
  func.func @transform_2(%arg0: i32) -> (i32, i32) {
    %c0_i32 = arith.constant 0 : i32
    %c0_i32_0 = arith.constant 0 : i32
    %c0_i32_1 = arith.constant 0 : i32
    return %c0_i32, %c0_i32_0 : i32, i32
  }
  func.func @transform_3(%arg0: i32) -> (i32, i32, i32) {
    %c0_i32 = arith.constant 0 : i32
    %c0_i32_0 = arith.constant 0 : i32
    %c0_i32_1 = arith.constant 0 : i32
    return %arg0, %c0_i32, %c0_i32_0 : i32, i32, i32
  }
  func.func @transform_4(%arg0: i32) -> (i32, i32) {
    %c0_i32 = arith.constant 0 : i32
    %c0_i32_0 = arith.constant 0 : i32
    return %arg0, %c0_i32 : i32, i32
  }
  func.func @transform_5(%arg0: i32) -> (i32, i32) {
    %c0_i32 = arith.constant 0 : i32
    %c0_i32_0 = arith.constant 0 : i32
    return %arg0, %c0_i32 : i32, i32
  }
}

module attributes {stable_mosaic.version = 11 : i64} {
  func.func @_conv_kernel(%arg0: i32, %arg1: memref<1x4x256xbf16, #tpu.memory_space<vmem>>, %arg2: memref<256x128xbf16, #tpu.memory_space<vmem>>, %arg3: memref<256x128xbf16, #tpu.memory_space<vmem>>, %arg4: memref<1x256xf32, #tpu.memory_space<vmem>>, %arg5: memref<1x256xf32, #tpu.memory_space<vmem>>, %arg6: memref<1x4x128xbf16, #tpu.memory_space<vmem>>, %arg7: memref<8x128xf32, #tpu.memory_space<vmem>>, %arg8: memref<8x128xf32, #tpu.memory_space<vmem>>) attributes {dimension_semantics = [#tpu.dimension_semantics<parallel>], iteration_bounds = array<i64: 2>, scalar_prefetch = 0 : i64, scratch_operands = 0 : i64, tpu.core_type = #tpu.core_type<tc>, window_params = [{transform_indices = @transform_0, window_bounds = array<i64: 1, 4, 256>}, {pipeline_mode = #tpu.pipeline_mode<synchronous>, transform_indices = @transform_1, window_bounds = array<i64: 256, 128>}, {pipeline_mode = #tpu.pipeline_mode<synchronous>, transform_indices = @transform_2, window_bounds = array<i64: 256, 128>}, {pipeline_mode = #tpu.pipeline_mode<synchronous>, transform_indices = @transform_3, window_bounds = array<i64: 1, 256>}, {pipeline_mode = #tpu.pipeline_mode<synchronous>, transform_indices = @transform_4, window_bounds = array<i64: 1, 256>}, {transform_indices = @transform_5, window_bounds = array<i64: 1, 4, 128>}, {transform_indices = @transform_6, window_bounds = array<i64: 8, 128>}, {transform_indices = @transform_7, window_bounds = array<i64: 8, 128>}]} {
    %c0 = arith.constant 0 : index
    %c0_0 = arith.constant 0 : index
    %c0_1 = arith.constant 0 : index
    %0 = vector.load %arg1[%c0, %c0_0, %c0_1] : memref<1x4x256xbf16, #tpu.memory_space<vmem>>, vector<1x4x256xbf16>
    %1 = vector.shape_cast %0 : vector<1x4x256xbf16> to vector<4x256xbf16>
    %2 = arith.extf %1 : vector<4x256xbf16> to vector<4x256xf32>
    %c0_2 = arith.constant 0 : index
    %c0_3 = arith.constant 0 : index
    %3 = vector.load %arg4[%c0_2, %c0_3] : memref<1x256xf32, #tpu.memory_space<vmem>>, vector<1x256xf32>
    %4 = vector.broadcast %3 : vector<1x256xf32> to vector<4x256xf32>
    %5 = arith.mulf %2, %4 : vector<4x256xf32>
    %c0_4 = arith.constant 0 : index
    %c0_5 = arith.constant 0 : index
    %6 = vector.load %arg5[%c0_4, %c0_5] : memref<1x256xf32, #tpu.memory_space<vmem>>, vector<1x256xf32>
    %7 = vector.broadcast %6 : vector<1x256xf32> to vector<4x256xf32>
    %8 = arith.addf %5, %7 : vector<4x256xf32>
    %cst = arith.constant 0.000000e+00 : f32
    %9 = vector.broadcast %cst : f32 to vector<4x256xf32>
    %10 = arith.cmpf oge, %8, %9 : vector<4x256xf32>
    %cst_6 = arith.constant 0.00999999977 : f32
    %11 = vector.broadcast %cst_6 : f32 to vector<4x256xf32>
    %12 = arith.mulf %11, %8 : vector<4x256xf32>
    %13 = arith.select %10, %8, %12 : vector<4x256xi1>, vector<4x256xf32>
    %14 = arith.truncf %13 : vector<4x256xf32> to vector<4x256xbf16>
    %cst_7 = arith.constant 0.000000e+00 : bf16
    %15 = vector.broadcast %cst_7 : bf16 to vector<1x256xbf16>
    %c0_8 = arith.constant 0 : index
    %c0_9 = arith.constant 0 : index
    %16 = vector.load %arg2[%c0_8, %c0_9] : memref<256x128xbf16, #tpu.memory_space<vmem>>, vector<256x128xbf16>
    %cst_10 = arith.constant dense<0.000000e+00> : vector<4x128xf32>
    %17 = tpu.matmul %14, %16, %cst_10 {dimension_numbers = #tpu.dot_dimension_numbers<[1], [0], [0], [1], [0, 0, 1, 1], [], []>} : vector<4x256xbf16>, vector<256x128xbf16>, vector<4x128xf32> -> vector<4x128xf32>
    %18 = vector.extract_strided_slice %14 {offsets = [0, 0], sizes = [3, 256], strides = [1, 1]} : vector<4x256xbf16> to vector<3x256xbf16>
    %19 = tpu.concatenate %15, %18 in 0 : vector<1x256xbf16>, vector<3x256xbf16> -> vector<4x256xbf16>
    %c0_11 = arith.constant 0 : index
    %c0_12 = arith.constant 0 : index
    %20 = vector.load %arg3[%c0_11, %c0_12] : memref<256x128xbf16, #tpu.memory_space<vmem>>, vector<256x128xbf16>
    %cst_13 = arith.constant dense<0.000000e+00> : vector<4x128xf32>
    %21 = tpu.matmul %19, %20, %cst_13 {dimension_numbers = #tpu.dot_dimension_numbers<[1], [0], [0], [1], [0, 0, 1, 1], [], []>} : vector<4x256xbf16>, vector<256x128xbf16>, vector<4x128xf32> -> vector<4x128xf32>
    %22 = arith.addf %17, %21 : vector<4x128xf32>
    %23 = arith.truncf %22 : vector<4x128xf32> to vector<4x128xbf16>
    %c0_14 = arith.constant 0 : index
    %c0_15 = arith.constant 0 : index
    %c0_16 = arith.constant 0 : index
    %24 = vector.load %arg6[%c0_14, %c0_15, %c0_16] : memref<1x4x128xbf16, #tpu.memory_space<vmem>>, vector<1x4x128xbf16>
    %25 = vector.shape_cast %24 : vector<1x4x128xbf16> to vector<4x128xbf16>
    %26 = vector.shape_cast %23 : vector<4x128xbf16> to vector<1x4x128xbf16>
    tpu.vector_store %arg6[%c0_14, %c0_15, %c0_16], %26 {strides = array<i32>} : memref<1x4x128xbf16, #tpu.memory_space<vmem>>, vector<1x4x128xbf16>,
    %cst_17 = arith.constant dense<0.000000e+00> : vector<128xf32>
    %27 = vector.multi_reduction <add>, %22, %cst_17 [0] : vector<4x128xf32> to vector<128xf32>
    %28 = vector.shape_cast %27 : vector<128xf32> to vector<1x128xf32>
    %29 = vector.shape_cast %28 : vector<1x128xf32> to vector<1x128xf32>
    %30 = vector.broadcast %29 : vector<1x128xf32> to vector<8x128xf32>
    %c0_18 = arith.constant 0 : index
    %c0_19 = arith.constant 0 : index
    %31 = vector.load %arg7[%c0_18, %c0_19] : memref<8x128xf32, #tpu.memory_space<vmem>>, vector<8x128xf32>
    tpu.vector_store %arg7[%c0_18, %c0_19], %30 {strides = array<i32>} : memref<8x128xf32, #tpu.memory_space<vmem>>, vector<8x128xf32>,
    %32 = arith.mulf %22, %22 : vector<4x128xf32>
    %cst_20 = arith.constant dense<0.000000e+00> : vector<128xf32>
    %33 = vector.multi_reduction <add>, %32, %cst_20 [0] : vector<4x128xf32> to vector<128xf32>
    %34 = vector.shape_cast %33 : vector<128xf32> to vector<1x128xf32>
    %35 = vector.shape_cast %34 : vector<1x128xf32> to vector<1x128xf32>
    %36 = vector.broadcast %35 : vector<1x128xf32> to vector<8x128xf32>
    %c0_21 = arith.constant 0 : index
    %c0_22 = arith.constant 0 : index
    %37 = vector.load %arg8[%c0_21, %c0_22] : memref<8x128xf32, #tpu.memory_space<vmem>>, vector<8x128xf32>
    tpu.vector_store %arg8[%c0_21, %c0_22], %36 {strides = array<i32>} : memref<8x128xf32, #tpu.memory_space<vmem>>, vector<8x128xf32>,
    return
  }
  func.func @transform_0(%arg0: i32) -> (i32, i32, i32) {
    %c0_i32 = arith.constant 0 : i32
    %c0_i32_0 = arith.constant 0 : i32
    %c0_i32_1 = arith.constant 0 : i32
    return %arg0, %c0_i32, %c0_i32_0 : i32, i32, i32
  }
  func.func @transform_1(%arg0: i32) -> (i32, i32) {
    %c0_i32 = arith.constant 0 : i32
    %c0_i32_0 = arith.constant 0 : i32
    %c0_i32_1 = arith.constant 0 : i32
    return %c0_i32, %c0_i32_0 : i32, i32
  }
  func.func @transform_2(%arg0: i32) -> (i32, i32) {
    %c0_i32 = arith.constant 0 : i32
    %c0_i32_0 = arith.constant 0 : i32
    %c0_i32_1 = arith.constant 0 : i32
    return %c0_i32, %c0_i32_0 : i32, i32
  }
  func.func @transform_3(%arg0: i32) -> (i32, i32) {
    %c0_i32 = arith.constant 0 : i32
    %c0_i32_0 = arith.constant 0 : i32
    %c0_i32_1 = arith.constant 0 : i32
    return %c0_i32, %c0_i32_0 : i32, i32
  }
  func.func @transform_4(%arg0: i32) -> (i32, i32) {
    %c0_i32 = arith.constant 0 : i32
    %c0_i32_0 = arith.constant 0 : i32
    %c0_i32_1 = arith.constant 0 : i32
    return %c0_i32, %c0_i32_0 : i32, i32
  }
  func.func @transform_5(%arg0: i32) -> (i32, i32, i32) {
    %c0_i32 = arith.constant 0 : i32
    %c0_i32_0 = arith.constant 0 : i32
    %c0_i32_1 = arith.constant 0 : i32
    return %arg0, %c0_i32, %c0_i32_0 : i32, i32, i32
  }
  func.func @transform_6(%arg0: i32) -> (i32, i32) {
    %c0_i32 = arith.constant 0 : i32
    %c0_i32_0 = arith.constant 0 : i32
    return %arg0, %c0_i32 : i32, i32
  }
  func.func @transform_7(%arg0: i32) -> (i32, i32) {
    %c0_i32 = arith.constant 0 : i32
    %c0_i32_0 = arith.constant 0 : i32
    return %arg0, %c0_i32 : i32, i32
  }
}

module attributes {stable_mosaic.version = 11 : i64} {
  func.func @_linear_kernel(%arg0: i32, %arg1: memref<2x512xbf16, #tpu.memory_space<vmem>>, %arg2: memref<512x128xbf16, #tpu.memory_space<vmem>>, %arg3: memref<1x512xf32, #tpu.memory_space<vmem>>, %arg4: memref<1x512xf32, #tpu.memory_space<vmem>>, %arg5: memref<1x128xf32, #tpu.memory_space<vmem>>, %arg6: memref<2x128xf32, #tpu.memory_space<vmem>>) attributes {dimension_semantics = [#tpu.dimension_semantics<arbitrary>], iteration_bounds = array<i64: 1>, scalar_prefetch = 0 : i64, scratch_operands = 0 : i64, tpu.core_type = #tpu.core_type<tc>, window_params = [{pipeline_mode = #tpu.pipeline_mode<synchronous>, transform_indices = @transform_0, window_bounds = array<i64: 2, 512>}, {pipeline_mode = #tpu.pipeline_mode<synchronous>, transform_indices = @transform_1, window_bounds = array<i64: 512, 128>}, {pipeline_mode = #tpu.pipeline_mode<synchronous>, transform_indices = @transform_2, window_bounds = array<i64: 1, 512>}, {pipeline_mode = #tpu.pipeline_mode<synchronous>, transform_indices = @transform_3, window_bounds = array<i64: 1, 512>}, {pipeline_mode = #tpu.pipeline_mode<synchronous>, transform_indices = @transform_4, window_bounds = array<i64: 1, 128>}, {pipeline_mode = #tpu.pipeline_mode<synchronous>, transform_indices = @transform_5, window_bounds = array<i64: 2, 128>}]} {
    %c0 = arith.constant 0 : index
    %c0_0 = arith.constant 0 : index
    %0 = vector.load %arg1[%c0, %c0_0] : memref<2x512xbf16, #tpu.memory_space<vmem>>, vector<2x512xbf16>
    %1 = arith.extf %0 : vector<2x512xbf16> to vector<2x512xf32>
    %c0_1 = arith.constant 0 : index
    %c0_2 = arith.constant 0 : index
    %2 = vector.load %arg3[%c0_1, %c0_2] : memref<1x512xf32, #tpu.memory_space<vmem>>, vector<1x512xf32>
    %3 = vector.broadcast %2 : vector<1x512xf32> to vector<2x512xf32>
    %4 = arith.mulf %1, %3 : vector<2x512xf32>
    %c0_3 = arith.constant 0 : index
    %c0_4 = arith.constant 0 : index
    %5 = vector.load %arg4[%c0_3, %c0_4] : memref<1x512xf32, #tpu.memory_space<vmem>>, vector<1x512xf32>
    %6 = vector.broadcast %5 : vector<1x512xf32> to vector<2x512xf32>
    %7 = arith.addf %4, %6 : vector<2x512xf32>
    %cst = arith.constant 0.000000e+00 : f32
    %8 = vector.broadcast %cst : f32 to vector<2x512xf32>
    %9 = arith.cmpf oge, %7, %8 : vector<2x512xf32>
    %cst_5 = arith.constant 0.00999999977 : f32
    %10 = vector.broadcast %cst_5 : f32 to vector<2x512xf32>
    %11 = arith.mulf %10, %7 : vector<2x512xf32>
    %12 = arith.select %9, %7, %11 : vector<2x512xi1>, vector<2x512xf32>
    %13 = arith.truncf %12 : vector<2x512xf32> to vector<2x512xbf16>
    %c0_6 = arith.constant 0 : index
    %c0_7 = arith.constant 0 : index
    %14 = vector.load %arg2[%c0_6, %c0_7] : memref<512x128xbf16, #tpu.memory_space<vmem>>, vector<512x128xbf16>
    %cst_8 = arith.constant dense<0.000000e+00> : vector<2x128xf32>
    %15 = tpu.matmul %13, %14, %cst_8 {dimension_numbers = #tpu.dot_dimension_numbers<[1], [0], [0], [1], [0, 0, 1, 1], [], []>} : vector<2x512xbf16>, vector<512x128xbf16>, vector<2x128xf32> -> vector<2x128xf32>
    %c0_9 = arith.constant 0 : index
    %c0_10 = arith.constant 0 : index
    %16 = vector.load %arg5[%c0_9, %c0_10] : memref<1x128xf32, #tpu.memory_space<vmem>>, vector<1x128xf32>
    %17 = vector.broadcast %16 : vector<1x128xf32> to vector<2x128xf32>
    %18 = arith.addf %15, %17 : vector<2x128xf32>
    %c0_11 = arith.constant 0 : index
    %c0_12 = arith.constant 0 : index
    %19 = vector.load %arg6[%c0_11, %c0_12] : memref<2x128xf32, #tpu.memory_space<vmem>>, vector<2x128xf32>
    tpu.vector_store %arg6[%c0_11, %c0_12], %18 {strides = array<i32>} : memref<2x128xf32, #tpu.memory_space<vmem>>, vector<2x128xf32>,
    return
  }
  func.func @transform_0(%arg0: i32) -> (i32, i32) {
    %c0_i32 = arith.constant 0 : i32
    %c0_i32_0 = arith.constant 0 : i32
    %c0_i32_1 = arith.constant 0 : i32
    return %c0_i32, %c0_i32_0 : i32, i32
  }
  func.func @transform_1(%arg0: i32) -> (i32, i32) {
    %c0_i32 = arith.constant 0 : i32
    %c0_i32_0 = arith.constant 0 : i32
    %c0_i32_1 = arith.constant 0 : i32
    return %c0_i32, %c0_i32_0 : i32, i32
  }
  func.func @transform_2(%arg0: i32) -> (i32, i32) {
    %c0_i32 = arith.constant 0 : i32
    %c0_i32_0 = arith.constant 0 : i32
    %c0_i32_1 = arith.constant 0 : i32
    return %c0_i32, %c0_i32_0 : i32, i32
  }
  func.func @transform_3(%arg0: i32) -> (i32, i32) {
    %c0_i32 = arith.constant 0 : i32
    %c0_i32_0 = arith.constant 0 : i32
    %c0_i32_1 = arith.constant 0 : i32
    return %c0_i32, %c0_i32_0 : i32, i32
  }
  func.func @transform_4(%arg0: i32) -> (i32, i32) {
    %c0_i32 = arith.constant 0 : i32
    %c0_i32_0 = arith.constant 0 : i32
    %c0_i32_1 = arith.constant 0 : i32
    return %c0_i32, %c0_i32_0 : i32, i32
  }
  func.func @transform_5(%arg0: i32) -> (i32, i32) {
    %c0_i32 = arith.constant 0 : i32
    %c0_i32_0 = arith.constant 0 : i32
    %c0_i32_1 = arith.constant 0 : i32
    return %c0_i32, %c0_i32_0 : i32, i32
  }
}

module attributes {stable_mosaic.version = 11 : i64} {
  func.func @_linear_kernel(%arg0: i32, %arg1: memref<2x8xf32, #tpu.memory_space<vmem>>, %arg2: memref<8x512xbf16, #tpu.memory_space<vmem>>, %arg3: memref<1x512xf32, #tpu.memory_space<vmem>>, %arg4: memref<2x512xbf16, #tpu.memory_space<vmem>>) attributes {dimension_semantics = [#tpu.dimension_semantics<arbitrary>], iteration_bounds = array<i64: 1>, scalar_prefetch = 0 : i64, scratch_operands = 0 : i64, tpu.core_type = #tpu.core_type<tc>, window_params = [{pipeline_mode = #tpu.pipeline_mode<synchronous>, transform_indices = @transform_0, window_bounds = array<i64: 2, 8>}, {pipeline_mode = #tpu.pipeline_mode<synchronous>, transform_indices = @transform_1, window_bounds = array<i64: 8, 512>}, {pipeline_mode = #tpu.pipeline_mode<synchronous>, transform_indices = @transform_2, window_bounds = array<i64: 1, 512>}, {pipeline_mode = #tpu.pipeline_mode<synchronous>, transform_indices = @transform_3, window_bounds = array<i64: 2, 512>}]} {
    %c0 = arith.constant 0 : index
    %c0_0 = arith.constant 0 : index
    %0 = vector.load %arg1[%c0, %c0_0] : memref<2x8xf32, #tpu.memory_space<vmem>>, vector<2x8xf32>
    %1 = arith.truncf %0 : vector<2x8xf32> to vector<2x8xbf16>
    %c0_1 = arith.constant 0 : index
    %c0_2 = arith.constant 0 : index
    %2 = vector.load %arg2[%c0_1, %c0_2] : memref<8x512xbf16, #tpu.memory_space<vmem>>, vector<8x512xbf16>
    %cst = arith.constant dense<0.000000e+00> : vector<2x512xf32>
    %3 = tpu.matmul %1, %2, %cst {dimension_numbers = #tpu.dot_dimension_numbers<[1], [0], [0], [1], [0, 0, 1, 1], [], []>} : vector<2x8xbf16>, vector<8x512xbf16>, vector<2x512xf32> -> vector<2x512xf32>
    %c0_3 = arith.constant 0 : index
    %c0_4 = arith.constant 0 : index
    %4 = vector.load %arg3[%c0_3, %c0_4] : memref<1x512xf32, #tpu.memory_space<vmem>>, vector<1x512xf32>
    %5 = vector.broadcast %4 : vector<1x512xf32> to vector<2x512xf32>
    %6 = arith.addf %3, %5 : vector<2x512xf32>
    %7 = arith.truncf %6 : vector<2x512xf32> to vector<2x512xbf16>
    %c0_5 = arith.constant 0 : index
    %c0_6 = arith.constant 0 : index
    %8 = vector.load %arg4[%c0_5, %c0_6] : memref<2x512xbf16, #tpu.memory_space<vmem>>, vector<2x512xbf16>
    tpu.vector_store %arg4[%c0_5, %c0_6], %7 {strides = array<i32>} : memref<2x512xbf16, #tpu.memory_space<vmem>>, vector<2x512xbf16>,
    return
  }
  func.func @transform_0(%arg0: i32) -> (i32, i32) {
    %c0_i32 = arith.constant 0 : i32
    %c0_i32_0 = arith.constant 0 : i32
    %c0_i32_1 = arith.constant 0 : i32
    return %c0_i32, %c0_i32_0 : i32, i32
  }
  func.func @transform_1(%arg0: i32) -> (i32, i32) {
    %c0_i32 = arith.constant 0 : i32
    %c0_i32_0 = arith.constant 0 : i32
    %c0_i32_1 = arith.constant 0 : i32
    return %c0_i32, %c0_i32_0 : i32, i32
  }
  func.func @transform_2(%arg0: i32) -> (i32, i32) {
    %c0_i32 = arith.constant 0 : i32
    %c0_i32_0 = arith.constant 0 : i32
    %c0_i32_1 = arith.constant 0 : i32
    return %c0_i32, %c0_i32_0 : i32, i32
  }
  func.func @transform_3(%arg0: i32) -> (i32, i32) {
    %c0_i32 = arith.constant 0 : i32
    %c0_i32_0 = arith.constant 0 : i32
    %c0_i32_1 = arith.constant 0 : i32
    return %c0_i32, %c0_i32_0 : i32, i32
  }
}

module attributes {stable_mosaic.version = 11 : i64} {
  func.func @_conv_kernel(%arg0: i32, %arg1: memref<1x4x256xbf16, #tpu.memory_space<vmem>>, %arg2: memref<256x256xbf16, #tpu.memory_space<vmem>>, %arg3: memref<256x256xbf16, #tpu.memory_space<vmem>>, %arg4: memref<1x4x256xbf16, #tpu.memory_space<vmem>>, %arg5: memref<8x256xf32, #tpu.memory_space<vmem>>, %arg6: memref<8x256xf32, #tpu.memory_space<vmem>>) attributes {dimension_semantics = [#tpu.dimension_semantics<parallel>], iteration_bounds = array<i64: 2>, scalar_prefetch = 0 : i64, scratch_operands = 0 : i64, tpu.core_type = #tpu.core_type<tc>, window_params = [{transform_indices = @transform_0, window_bounds = array<i64: 1, 4, 256>}, {pipeline_mode = #tpu.pipeline_mode<synchronous>, transform_indices = @transform_1, window_bounds = array<i64: 256, 256>}, {pipeline_mode = #tpu.pipeline_mode<synchronous>, transform_indices = @transform_2, window_bounds = array<i64: 256, 256>}, {transform_indices = @transform_3, window_bounds = array<i64: 1, 4, 256>}, {transform_indices = @transform_4, window_bounds = array<i64: 8, 256>}, {transform_indices = @transform_5, window_bounds = array<i64: 8, 256>}]} {
    %c0 = arith.constant 0 : index
    %c0_0 = arith.constant 0 : index
    %c0_1 = arith.constant 0 : index
    %0 = vector.load %arg1[%c0, %c0_0, %c0_1] : memref<1x4x256xbf16, #tpu.memory_space<vmem>>, vector<1x4x256xbf16>
    %1 = vector.shape_cast %0 : vector<1x4x256xbf16> to vector<4x256xbf16>
    %cst = arith.constant 0.000000e+00 : bf16
    %2 = vector.broadcast %cst : bf16 to vector<1x256xbf16>
    %c0_2 = arith.constant 0 : index
    %c0_3 = arith.constant 0 : index
    %3 = vector.load %arg2[%c0_2, %c0_3] : memref<256x256xbf16, #tpu.memory_space<vmem>>, vector<256x256xbf16>
    %cst_4 = arith.constant dense<0.000000e+00> : vector<4x256xf32>
    %4 = tpu.matmul %1, %3, %cst_4 {dimension_numbers = #tpu.dot_dimension_numbers<[1], [0], [0], [1], [0, 0, 1, 1], [], []>} : vector<4x256xbf16>, vector<256x256xbf16>, vector<4x256xf32> -> vector<4x256xf32>
    %5 = vector.extract_strided_slice %1 {offsets = [1, 0], sizes = [3, 256], strides = [1, 1]} : vector<4x256xbf16> to vector<3x256xbf16>
    %6 = tpu.concatenate %5, %2 in 0 : vector<3x256xbf16>, vector<1x256xbf16> -> vector<4x256xbf16>
    %c0_5 = arith.constant 0 : index
    %c0_6 = arith.constant 0 : index
    %7 = vector.load %arg3[%c0_5, %c0_6] : memref<256x256xbf16, #tpu.memory_space<vmem>>, vector<256x256xbf16>
    %cst_7 = arith.constant dense<0.000000e+00> : vector<4x256xf32>
    %8 = tpu.matmul %6, %7, %cst_7 {dimension_numbers = #tpu.dot_dimension_numbers<[1], [0], [0], [1], [0, 0, 1, 1], [], []>} : vector<4x256xbf16>, vector<256x256xbf16>, vector<4x256xf32> -> vector<4x256xf32>
    %9 = arith.addf %4, %8 : vector<4x256xf32>
    %10 = arith.truncf %9 : vector<4x256xf32> to vector<4x256xbf16>
    %c0_8 = arith.constant 0 : index
    %c0_9 = arith.constant 0 : index
    %c0_10 = arith.constant 0 : index
    %11 = vector.load %arg4[%c0_8, %c0_9, %c0_10] : memref<1x4x256xbf16, #tpu.memory_space<vmem>>, vector<1x4x256xbf16>
    %12 = vector.shape_cast %11 : vector<1x4x256xbf16> to vector<4x256xbf16>
    %13 = vector.shape_cast %10 : vector<4x256xbf16> to vector<1x4x256xbf16>
    tpu.vector_store %arg4[%c0_8, %c0_9, %c0_10], %13 {strides = array<i32>} : memref<1x4x256xbf16, #tpu.memory_space<vmem>>, vector<1x4x256xbf16>,
    %cst_11 = arith.constant dense<0.000000e+00> : vector<256xf32>
    %14 = vector.multi_reduction <add>, %9, %cst_11 [0] : vector<4x256xf32> to vector<256xf32>
    %15 = vector.shape_cast %14 : vector<256xf32> to vector<1x256xf32>
    %16 = vector.shape_cast %15 : vector<1x256xf32> to vector<1x256xf32>
    %17 = vector.broadcast %16 : vector<1x256xf32> to vector<8x256xf32>
    %c0_12 = arith.constant 0 : index
    %c0_13 = arith.constant 0 : index
    %18 = vector.load %arg5[%c0_12, %c0_13] : memref<8x256xf32, #tpu.memory_space<vmem>>, vector<8x256xf32>
    tpu.vector_store %arg5[%c0_12, %c0_13], %17 {strides = array<i32>} : memref<8x256xf32, #tpu.memory_space<vmem>>, vector<8x256xf32>,
    %19 = arith.mulf %9, %9 : vector<4x256xf32>
    %cst_14 = arith.constant dense<0.000000e+00> : vector<256xf32>
    %20 = vector.multi_reduction <add>, %19, %cst_14 [0] : vector<4x256xf32> to vector<256xf32>
    %21 = vector.shape_cast %20 : vector<256xf32> to vector<1x256xf32>
    %22 = vector.shape_cast %21 : vector<1x256xf32> to vector<1x256xf32>
    %23 = vector.broadcast %22 : vector<1x256xf32> to vector<8x256xf32>
    %c0_15 = arith.constant 0 : index
    %c0_16 = arith.constant 0 : index
    %24 = vector.load %arg6[%c0_15, %c0_16] : memref<8x256xf32, #tpu.memory_space<vmem>>, vector<8x256xf32>
    tpu.vector_store %arg6[%c0_15, %c0_16], %23 {strides = array<i32>} : memref<8x256xf32, #tpu.memory_space<vmem>>, vector<8x256xf32>,
    return
  }
  func.func @transform_0(%arg0: i32) -> (i32, i32, i32) {
    %c0_i32 = arith.constant 0 : i32
    %c0_i32_0 = arith.constant 0 : i32
    %c0_i32_1 = arith.constant 0 : i32
    return %arg0, %c0_i32, %c0_i32_0 : i32, i32, i32
  }
  func.func @transform_1(%arg0: i32) -> (i32, i32) {
    %c0_i32 = arith.constant 0 : i32
    %c0_i32_0 = arith.constant 0 : i32
    %c0_i32_1 = arith.constant 0 : i32
    return %c0_i32, %c0_i32_0 : i32, i32
  }
  func.func @transform_2(%arg0: i32) -> (i32, i32) {
    %c0_i32 = arith.constant 0 : i32
    %c0_i32_0 = arith.constant 0 : i32
    %c0_i32_1 = arith.constant 0 : i32
    return %c0_i32, %c0_i32_0 : i32, i32
  }
  func.func @transform_3(%arg0: i32) -> (i32, i32, i32) {
    %c0_i32 = arith.constant 0 : i32
    %c0_i32_0 = arith.constant 0 : i32
    %c0_i32_1 = arith.constant 0 : i32
    return %arg0, %c0_i32, %c0_i32_0 : i32, i32, i32
  }
  func.func @transform_4(%arg0: i32) -> (i32, i32) {
    %c0_i32 = arith.constant 0 : i32
    %c0_i32_0 = arith.constant 0 : i32
    return %arg0, %c0_i32 : i32, i32
  }
  func.func @transform_5(%arg0: i32) -> (i32, i32) {
    %c0_i32 = arith.constant 0 : i32
    %c0_i32_0 = arith.constant 0 : i32
    return %arg0, %c0_i32 : i32, i32
  }
}

module attributes {stable_mosaic.version = 11 : i64} {
  func.func @_conv_kernel(%arg0: i32, %arg1: memref<1x8x128xbf16, #tpu.memory_space<vmem>>, %arg2: memref<128x256xbf16, #tpu.memory_space<vmem>>, %arg3: memref<128x256xbf16, #tpu.memory_space<vmem>>, %arg4: memref<1x128xf32, #tpu.memory_space<vmem>>, %arg5: memref<1x128xf32, #tpu.memory_space<vmem>>, %arg6: memref<1x8x256xbf16, #tpu.memory_space<vmem>>, %arg7: memref<8x256xf32, #tpu.memory_space<vmem>>, %arg8: memref<8x256xf32, #tpu.memory_space<vmem>>) attributes {dimension_semantics = [#tpu.dimension_semantics<parallel>], iteration_bounds = array<i64: 2>, scalar_prefetch = 0 : i64, scratch_operands = 0 : i64, tpu.core_type = #tpu.core_type<tc>, window_params = [{transform_indices = @transform_0, window_bounds = array<i64: 1, 8, 128>}, {pipeline_mode = #tpu.pipeline_mode<synchronous>, transform_indices = @transform_1, window_bounds = array<i64: 128, 256>}, {pipeline_mode = #tpu.pipeline_mode<synchronous>, transform_indices = @transform_2, window_bounds = array<i64: 128, 256>}, {pipeline_mode = #tpu.pipeline_mode<synchronous>, transform_indices = @transform_3, window_bounds = array<i64: 1, 128>}, {pipeline_mode = #tpu.pipeline_mode<synchronous>, transform_indices = @transform_4, window_bounds = array<i64: 1, 128>}, {transform_indices = @transform_5, window_bounds = array<i64: 1, 8, 256>}, {transform_indices = @transform_6, window_bounds = array<i64: 8, 256>}, {transform_indices = @transform_7, window_bounds = array<i64: 8, 256>}]} {
    %c0 = arith.constant 0 : index
    %c0_0 = arith.constant 0 : index
    %c0_1 = arith.constant 0 : index
    %0 = vector.load %arg1[%c0, %c0_0, %c0_1] : memref<1x8x128xbf16, #tpu.memory_space<vmem>>, vector<1x8x128xbf16>
    %1 = vector.shape_cast %0 : vector<1x8x128xbf16> to vector<8x128xbf16>
    %2 = arith.extf %1 : vector<8x128xbf16> to vector<8x128xf32>
    %c0_2 = arith.constant 0 : index
    %c0_3 = arith.constant 0 : index
    %3 = vector.load %arg4[%c0_2, %c0_3] : memref<1x128xf32, #tpu.memory_space<vmem>>, vector<1x128xf32>
    %4 = vector.broadcast %3 : vector<1x128xf32> to vector<8x128xf32>
    %5 = arith.mulf %2, %4 : vector<8x128xf32>
    %c0_4 = arith.constant 0 : index
    %c0_5 = arith.constant 0 : index
    %6 = vector.load %arg5[%c0_4, %c0_5] : memref<1x128xf32, #tpu.memory_space<vmem>>, vector<1x128xf32>
    %7 = vector.broadcast %6 : vector<1x128xf32> to vector<8x128xf32>
    %8 = arith.addf %5, %7 : vector<8x128xf32>
    %cst = arith.constant 0.000000e+00 : f32
    %9 = vector.broadcast %cst : f32 to vector<8x128xf32>
    %10 = arith.cmpf oge, %8, %9 : vector<8x128xf32>
    %cst_6 = arith.constant 0.00999999977 : f32
    %11 = vector.broadcast %cst_6 : f32 to vector<8x128xf32>
    %12 = arith.mulf %11, %8 : vector<8x128xf32>
    %13 = arith.select %10, %8, %12 : vector<8x128xi1>, vector<8x128xf32>
    %14 = arith.truncf %13 : vector<8x128xf32> to vector<8x128xbf16>
    %cst_7 = arith.constant 0.000000e+00 : bf16
    %15 = vector.broadcast %cst_7 : bf16 to vector<1x128xbf16>
    %c0_8 = arith.constant 0 : index
    %c0_9 = arith.constant 0 : index
    %16 = vector.load %arg2[%c0_8, %c0_9] : memref<128x256xbf16, #tpu.memory_space<vmem>>, vector<128x256xbf16>
    %cst_10 = arith.constant dense<0.000000e+00> : vector<8x256xf32>
    %17 = tpu.matmul %14, %16, %cst_10 {dimension_numbers = #tpu.dot_dimension_numbers<[1], [0], [0], [1], [0, 0, 1, 1], [], []>} : vector<8x128xbf16>, vector<128x256xbf16>, vector<8x256xf32> -> vector<8x256xf32>
    %18 = vector.extract_strided_slice %14 {offsets = [1, 0], sizes = [7, 128], strides = [1, 1]} : vector<8x128xbf16> to vector<7x128xbf16>
    %19 = tpu.concatenate %18, %15 in 0 : vector<7x128xbf16>, vector<1x128xbf16> -> vector<8x128xbf16>
    %c0_11 = arith.constant 0 : index
    %c0_12 = arith.constant 0 : index
    %20 = vector.load %arg3[%c0_11, %c0_12] : memref<128x256xbf16, #tpu.memory_space<vmem>>, vector<128x256xbf16>
    %cst_13 = arith.constant dense<0.000000e+00> : vector<8x256xf32>
    %21 = tpu.matmul %19, %20, %cst_13 {dimension_numbers = #tpu.dot_dimension_numbers<[1], [0], [0], [1], [0, 0, 1, 1], [], []>} : vector<8x128xbf16>, vector<128x256xbf16>, vector<8x256xf32> -> vector<8x256xf32>
    %22 = arith.addf %17, %21 : vector<8x256xf32>
    %23 = arith.truncf %22 : vector<8x256xf32> to vector<8x256xbf16>
    %c0_14 = arith.constant 0 : index
    %c0_15 = arith.constant 0 : index
    %c0_16 = arith.constant 0 : index
    %24 = vector.load %arg6[%c0_14, %c0_15, %c0_16] : memref<1x8x256xbf16, #tpu.memory_space<vmem>>, vector<1x8x256xbf16>
    %25 = vector.shape_cast %24 : vector<1x8x256xbf16> to vector<8x256xbf16>
    %26 = vector.shape_cast %23 : vector<8x256xbf16> to vector<1x8x256xbf16>
    tpu.vector_store %arg6[%c0_14, %c0_15, %c0_16], %26 {strides = array<i32>} : memref<1x8x256xbf16, #tpu.memory_space<vmem>>, vector<1x8x256xbf16>,
    %cst_17 = arith.constant dense<0.000000e+00> : vector<256xf32>
    %27 = vector.multi_reduction <add>, %22, %cst_17 [0] : vector<8x256xf32> to vector<256xf32>
    %28 = vector.shape_cast %27 : vector<256xf32> to vector<1x256xf32>
    %29 = vector.shape_cast %28 : vector<1x256xf32> to vector<1x256xf32>
    %30 = vector.broadcast %29 : vector<1x256xf32> to vector<8x256xf32>
    %c0_18 = arith.constant 0 : index
    %c0_19 = arith.constant 0 : index
    %31 = vector.load %arg7[%c0_18, %c0_19] : memref<8x256xf32, #tpu.memory_space<vmem>>, vector<8x256xf32>
    tpu.vector_store %arg7[%c0_18, %c0_19], %30 {strides = array<i32>} : memref<8x256xf32, #tpu.memory_space<vmem>>, vector<8x256xf32>,
    %32 = arith.mulf %22, %22 : vector<8x256xf32>
    %cst_20 = arith.constant dense<0.000000e+00> : vector<256xf32>
    %33 = vector.multi_reduction <add>, %32, %cst_20 [0] : vector<8x256xf32> to vector<256xf32>
    %34 = vector.shape_cast %33 : vector<256xf32> to vector<1x256xf32>
    %35 = vector.shape_cast %34 : vector<1x256xf32> to vector<1x256xf32>
    %36 = vector.broadcast %35 : vector<1x256xf32> to vector<8x256xf32>
    %c0_21 = arith.constant 0 : index
    %c0_22 = arith.constant 0 : index
    %37 = vector.load %arg8[%c0_21, %c0_22] : memref<8x256xf32, #tpu.memory_space<vmem>>, vector<8x256xf32>
    tpu.vector_store %arg8[%c0_21, %c0_22], %36 {strides = array<i32>} : memref<8x256xf32, #tpu.memory_space<vmem>>, vector<8x256xf32>,
    return
  }
  func.func @transform_0(%arg0: i32) -> (i32, i32, i32) {
    %c0_i32 = arith.constant 0 : i32
    %c0_i32_0 = arith.constant 0 : i32
    %c0_i32_1 = arith.constant 0 : i32
    return %arg0, %c0_i32, %c0_i32_0 : i32, i32, i32
  }
  func.func @transform_1(%arg0: i32) -> (i32, i32) {
    %c0_i32 = arith.constant 0 : i32
    %c0_i32_0 = arith.constant 0 : i32
    %c0_i32_1 = arith.constant 0 : i32
    return %c0_i32, %c0_i32_0 : i32, i32
  }
  func.func @transform_2(%arg0: i32) -> (i32, i32) {
    %c0_i32 = arith.constant 0 : i32
    %c0_i32_0 = arith.constant 0 : i32
    %c0_i32_1 = arith.constant 0 : i32
    return %c0_i32, %c0_i32_0 : i32, i32
  }
  func.func @transform_3(%arg0: i32) -> (i32, i32) {
    %c0_i32 = arith.constant 0 : i32
    %c0_i32_0 = arith.constant 0 : i32
    %c0_i32_1 = arith.constant 0 : i32
    return %c0_i32, %c0_i32_0 : i32, i32
  }
  func.func @transform_4(%arg0: i32) -> (i32, i32) {
    %c0_i32 = arith.constant 0 : i32
    %c0_i32_0 = arith.constant 0 : i32
    %c0_i32_1 = arith.constant 0 : i32
    return %c0_i32, %c0_i32_0 : i32, i32
  }
  func.func @transform_5(%arg0: i32) -> (i32, i32, i32) {
    %c0_i32 = arith.constant 0 : i32
    %c0_i32_0 = arith.constant 0 : i32
    %c0_i32_1 = arith.constant 0 : i32
    return %arg0, %c0_i32, %c0_i32_0 : i32, i32, i32
  }
  func.func @transform_6(%arg0: i32) -> (i32, i32) {
    %c0_i32 = arith.constant 0 : i32
    %c0_i32_0 = arith.constant 0 : i32
    return %arg0, %c0_i32 : i32, i32
  }
  func.func @transform_7(%arg0: i32) -> (i32, i32) {
    %c0_i32 = arith.constant 0 : i32
    %c0_i32_0 = arith.constant 0 : i32
    return %arg0, %c0_i32 : i32, i32
  }
}

module attributes {stable_mosaic.version = 11 : i64} {
  func.func @_conv_kernel(%arg0: i32, %arg1: memref<1x16x128xbf16, #tpu.memory_space<vmem>>, %arg2: memref<128x4xbf16, #tpu.memory_space<vmem>>, %arg3: memref<128x4xbf16, #tpu.memory_space<vmem>>, %arg4: memref<128x4xbf16, #tpu.memory_space<vmem>>, %arg5: memref<1x128xf32, #tpu.memory_space<vmem>>, %arg6: memref<1x128xf32, #tpu.memory_space<vmem>>, %arg7: memref<1x4xf32, #tpu.memory_space<vmem>>, %arg8: memref<1x16x4xf32, #tpu.memory_space<vmem>>) attributes {dimension_semantics = [#tpu.dimension_semantics<parallel>], iteration_bounds = array<i64: 2>, scalar_prefetch = 0 : i64, scratch_operands = 0 : i64, tpu.core_type = #tpu.core_type<tc>, window_params = [{transform_indices = @transform_0, window_bounds = array<i64: 1, 16, 128>}, {pipeline_mode = #tpu.pipeline_mode<synchronous>, transform_indices = @transform_1, window_bounds = array<i64: 128, 4>}, {pipeline_mode = #tpu.pipeline_mode<synchronous>, transform_indices = @transform_2, window_bounds = array<i64: 128, 4>}, {pipeline_mode = #tpu.pipeline_mode<synchronous>, transform_indices = @transform_3, window_bounds = array<i64: 128, 4>}, {pipeline_mode = #tpu.pipeline_mode<synchronous>, transform_indices = @transform_4, window_bounds = array<i64: 1, 128>}, {pipeline_mode = #tpu.pipeline_mode<synchronous>, transform_indices = @transform_5, window_bounds = array<i64: 1, 128>}, {pipeline_mode = #tpu.pipeline_mode<synchronous>, transform_indices = @transform_6, window_bounds = array<i64: 1, 4>}, {transform_indices = @transform_7, window_bounds = array<i64: 1, 16, 4>}]} {
    %c0 = arith.constant 0 : index
    %c0_0 = arith.constant 0 : index
    %c0_1 = arith.constant 0 : index
    %0 = vector.load %arg1[%c0, %c0_0, %c0_1] : memref<1x16x128xbf16, #tpu.memory_space<vmem>>, vector<1x16x128xbf16>
    %1 = vector.shape_cast %0 : vector<1x16x128xbf16> to vector<16x128xbf16>
    %2 = arith.extf %1 : vector<16x128xbf16> to vector<16x128xf32>
    %c0_2 = arith.constant 0 : index
    %c0_3 = arith.constant 0 : index
    %3 = vector.load %arg5[%c0_2, %c0_3] : memref<1x128xf32, #tpu.memory_space<vmem>>, vector<1x128xf32>
    %4 = vector.broadcast %3 : vector<1x128xf32> to vector<16x128xf32>
    %5 = arith.mulf %2, %4 : vector<16x128xf32>
    %c0_4 = arith.constant 0 : index
    %c0_5 = arith.constant 0 : index
    %6 = vector.load %arg6[%c0_4, %c0_5] : memref<1x128xf32, #tpu.memory_space<vmem>>, vector<1x128xf32>
    %7 = vector.broadcast %6 : vector<1x128xf32> to vector<16x128xf32>
    %8 = arith.addf %5, %7 : vector<16x128xf32>
    %cst = arith.constant 0.000000e+00 : f32
    %9 = vector.broadcast %cst : f32 to vector<16x128xf32>
    %10 = arith.cmpf oge, %8, %9 : vector<16x128xf32>
    %cst_6 = arith.constant 0.00999999977 : f32
    %11 = vector.broadcast %cst_6 : f32 to vector<16x128xf32>
    %12 = arith.mulf %11, %8 : vector<16x128xf32>
    %13 = arith.select %10, %8, %12 : vector<16x128xi1>, vector<16x128xf32>
    %14 = arith.truncf %13 : vector<16x128xf32> to vector<16x128xbf16>
    %cst_7 = arith.constant 0.000000e+00 : bf16
    %15 = vector.broadcast %cst_7 : bf16 to vector<1x128xbf16>
    %c0_8 = arith.constant 0 : index
    %c0_9 = arith.constant 0 : index
    %16 = vector.load %arg2[%c0_8, %c0_9] : memref<128x4xbf16, #tpu.memory_space<vmem>>, vector<128x4xbf16>
    %cst_10 = arith.constant dense<0.000000e+00> : vector<16x4xf32>
    %17 = tpu.matmul %14, %16, %cst_10 {dimension_numbers = #tpu.dot_dimension_numbers<[1], [0], [0], [1], [0, 0, 1, 1], [], []>} : vector<16x128xbf16>, vector<128x4xbf16>, vector<16x4xf32> -> vector<16x4xf32>
    %18 = vector.extract_strided_slice %14 {offsets = [0, 0], sizes = [15, 128], strides = [1, 1]} : vector<16x128xbf16> to vector<15x128xbf16>
    %19 = tpu.concatenate %15, %18 in 0 : vector<1x128xbf16>, vector<15x128xbf16> -> vector<16x128xbf16>
    %c0_11 = arith.constant 0 : index
    %c0_12 = arith.constant 0 : index
    %20 = vector.load %arg3[%c0_11, %c0_12] : memref<128x4xbf16, #tpu.memory_space<vmem>>, vector<128x4xbf16>
    %cst_13 = arith.constant dense<0.000000e+00> : vector<16x4xf32>
    %21 = tpu.matmul %19, %20, %cst_13 {dimension_numbers = #tpu.dot_dimension_numbers<[1], [0], [0], [1], [0, 0, 1, 1], [], []>} : vector<16x128xbf16>, vector<128x4xbf16>, vector<16x4xf32> -> vector<16x4xf32>
    %22 = arith.addf %17, %21 : vector<16x4xf32>
    %23 = vector.extract_strided_slice %14 {offsets = [1, 0], sizes = [15, 128], strides = [1, 1]} : vector<16x128xbf16> to vector<15x128xbf16>
    %24 = tpu.concatenate %23, %15 in 0 : vector<15x128xbf16>, vector<1x128xbf16> -> vector<16x128xbf16>
    %c0_14 = arith.constant 0 : index
    %c0_15 = arith.constant 0 : index
    %25 = vector.load %arg4[%c0_14, %c0_15] : memref<128x4xbf16, #tpu.memory_space<vmem>>, vector<128x4xbf16>
    %cst_16 = arith.constant dense<0.000000e+00> : vector<16x4xf32>
    %26 = tpu.matmul %24, %25, %cst_16 {dimension_numbers = #tpu.dot_dimension_numbers<[1], [0], [0], [1], [0, 0, 1, 1], [], []>} : vector<16x128xbf16>, vector<128x4xbf16>, vector<16x4xf32> -> vector<16x4xf32>
    %27 = arith.addf %22, %26 : vector<16x4xf32>
    %c0_17 = arith.constant 0 : index
    %c0_18 = arith.constant 0 : index
    %28 = vector.load %arg7[%c0_17, %c0_18] : memref<1x4xf32, #tpu.memory_space<vmem>>, vector<1x4xf32>
    %29 = vector.broadcast %28 : vector<1x4xf32> to vector<16x4xf32>
    %30 = arith.addf %27, %29 : vector<16x4xf32>
    %31 = math.tanh %30 : vector<16x4xf32>
    %cst_19 = arith.constant 2.000000e+00 : f32
    %32 = vector.broadcast %cst_19 : f32 to vector<16x4xf32>
    %33 = arith.mulf %32, %31 : vector<16x4xf32>
    %c0_20 = arith.constant 0 : index
    %c0_21 = arith.constant 0 : index
    %c0_22 = arith.constant 0 : index
    %34 = vector.load %arg8[%c0_20, %c0_21, %c0_22] : memref<1x16x4xf32, #tpu.memory_space<vmem>>, vector<1x16x4xf32>
    %35 = vector.shape_cast %34 : vector<1x16x4xf32> to vector<16x4xf32>
    %36 = vector.shape_cast %33 : vector<16x4xf32> to vector<1x16x4xf32>
    tpu.vector_store %arg8[%c0_20, %c0_21, %c0_22], %36 {strides = array<i32>} : memref<1x16x4xf32, #tpu.memory_space<vmem>>, vector<1x16x4xf32>,
    return
  }
  func.func @transform_0(%arg0: i32) -> (i32, i32, i32) {
    %c0_i32 = arith.constant 0 : i32
    %c0_i32_0 = arith.constant 0 : i32
    %c0_i32_1 = arith.constant 0 : i32
    return %arg0, %c0_i32, %c0_i32_0 : i32, i32, i32
  }
  func.func @transform_1(%arg0: i32) -> (i32, i32) {
    %c0_i32 = arith.constant 0 : i32
    %c0_i32_0 = arith.constant 0 : i32
    %c0_i32_1 = arith.constant 0 : i32
    return %c0_i32, %c0_i32_0 : i32, i32
  }
  func.func @transform_2(%arg0: i32) -> (i32, i32) {
    %c0_i32 = arith.constant 0 : i32
    %c0_i32_0 = arith.constant 0 : i32
    %c0_i32_1 = arith.constant 0 : i32
    return %c0_i32, %c0_i32_0 : i32, i32
  }
  func.func @transform_3(%arg0: i32) -> (i32, i32) {
    %c0_i32 = arith.constant 0 : i32
    %c0_i32_0 = arith.constant 0 : i32
    %c0_i32_1 = arith.constant 0 : i32
    return %c0_i32, %c0_i32_0 : i32, i32
  }
  func.func @transform_4(%arg0: i32) -> (i32, i32) {
    %c0_i32 = arith.constant 0 : i32
    %c0_i32_0 = arith.constant 0 : i32
    %c0_i32_1 = arith.constant 0 : i32
    return %c0_i32, %c0_i32_0 : i32, i32
  }
  func.func @transform_5(%arg0: i32) -> (i32, i32) {
    %c0_i32 = arith.constant 0 : i32
    %c0_i32_0 = arith.constant 0 : i32
    %c0_i32_1 = arith.constant 0 : i32
    return %c0_i32, %c0_i32_0 : i32, i32
  }
  func.func @transform_6(%arg0: i32) -> (i32, i32) {
    %c0_i32 = arith.constant 0 : i32
    %c0_i32_0 = arith.constant 0 : i32
    %c0_i32_1 = arith.constant 0 : i32
    return %c0_i32, %c0_i32_0 : i32, i32
  }
  func.func @transform_7(%arg0: i32) -> (i32, i32, i32) {
    %c0_i32 = arith.constant 0 : i32
    %c0_i32_0 = arith.constant 0 : i32
    %c0_i32_1 = arith.constant 0 : i32
    return %arg0, %c0_i32, %c0_i32_0 : i32, i32, i32
  }
}

</mosaic_0001>

<bundles_post_ra>
// kernel: tile.33
= control target key start
LH: loop header
LB: loop body
LE: loop exit
PB: predicated region body
PF: predicated region fallthrough
CT: control target
= control target key end

     0   :  { %s22_s0 = inlined_call_operand.vmem [shape: f32[128], index: 0, kind: input, shape index: {}]   ;;  %s23_s1 = inlined_call_operand.vmem [shape: f32[2,128], index: 1, kind: output, shape index: {}]  }
   0x1   :  { %v4_v0 = vld [vmem:[%s22_s0] ss:$0 sm:$0xff] }
   0x2   :  { %5 = vst [vmem:[%s23_s1] sm:$0x3] %v4_v0 }

// kernel: tile.43
= control target key start
LH: loop header
LB: loop body
LE: loop exit
PB: predicated region body
PF: predicated region fallthrough
CT: control target
= control target key end

     0   :  { %s22_s0 = inlined_call_operand.vmem [shape: f32[128], index: 0, kind: input, shape index: {}]   ;;  %s23_s1 = inlined_call_operand.vmem [shape: f32[4,128], index: 1, kind: output, shape index: {}]  }
   0x1   :  { %v4_v0 = vld [vmem:[%s22_s0] ss:$0 sm:$0xff] }
   0x2   :  { %5 = vst [vmem:[%s23_s1] sm:$0xf] %v4_v0 }

// kernel: _lambda_.13
= control target key start
LH: loop header
LB: loop body
LE: loop exit
PB: predicated region body
PF: predicated region fallthrough
CT: control target
= control target key end

     0   :  { %s492_s18 = smov 0   ;;  %s526_s0 = inlined_call_operand.vmem [shape: f32[2,8,8], index: 0, kind: input, shape index: {}]   ;;  %s527_s1 = inlined_call_operand.vmem [shape: bf16[8,128], index: 1, kind: input, shape index: {}]   ;;  %s528_s2 = inlined_call_operand.vmem [shape: bf16[8,128], index: 2, kind: input, shape index: {}]   ;;  %s529_s3 = inlined_call_operand.vmem [shape: bf16[2,8,128], index: 3, kind: output, shape index: {0}]   ;;  %s530_s4 = inlined_call_operand.vmem [shape: f32[16,128], index: 4, kind: output, shape index: {1}]   ;;  %s531_s5 = inlined_call_operand.vmem [shape: f32[16,128], index: 5, kind: output, shape index: {2}]  }
   0x1 LB: > { %s433_s19 = sadd.s32 4294967295, %s460_s18   ;;  %p437_p0 = scmp.ge.s32.totalorder %s460_s18, 1  ;;  %s460_s18 = sphi %s492_s18, %s16_s18  }
   0x2   : > { %p191_p1 = scmp.lt.s32.totalorder %s460_s18, 3 }
   0x4   : > { %p192_p2 = pnand %p437_p0, %p191_p1 }
   0x5   : > { %p225_p3 = scmp.lt.s32.totalorder (!%p192_p2), %s433_s19, 1 }
   0x6   : > { %195 = sbr.rel (%p192_p2) target bundleno = 171 (0xab), region = 32 }
   0xb   : > { %v244_v0 = vld [vmem:[%s527_s1] sm:$0xf]  ;;  %vm265_vm0 = vcmask 1043456   ;;  %s533_s19 = smov (!%p225_p3, %s433_s19), 1  ;;  %vm261_vm1 = vcmask 64512   ;;  %vm256_vm2 = vcmask 1040384  }
   0xc   : > { %v286_v1 = vsel %vm265_vm0, %v244_v0, 0  ;;  %v260_v2 = vld [vmem:[%s528_s2] sm:$0xf]  ;;  %s506_s24 = sshll.u32 %s533_s19, 3  ;;  %vm257_vm3 = vsmask.f32 256 }
   0xd   : > { %295 = vmatpush.bf16.msra.mxu1 %v286_v1  ;;  %v267_v3 = vsel %vm265_vm0, %v260_v2, 0  ;;  %s228_s27 = scalar_lea.vmem %s526_s0, %s506_s24  ;;  %vm258_vm4 = vmand %vm256_vm2, %vm257_vm3  ;;  %s439_s28 = sshll.u32 %s533_s19, 2 }
   0xe   : > { %276 = vmatpush.bf16.msra.mxu0 %v267_v3  ;;  %v242_v4 = vld [vmem:[%s228_s27] sm:$0xff]  ;;  %s232_s6 = scalar_lea.vmem %s529_s3, %s439_s28  ;;  %s236_s9 = scalar_lea.vmem %s530_s4, %s506_s24 }
   0xf   : > { %v243_v5 = vpack.c.bf16 %v242_v4, %v242_v4  ;;  %s240_s12 = scalar_lea.vmem %s531_s5, %s506_s24 }
  0x11   : > { %v246_v6 = vunpack.c.l.b16 %v243_v5  ;;  %443 = vmatmul.msk.bf16.vlgmr.msra.gmra.mxu1 %vm261_vm1, %v243_v5 }
  0x13   : > { %v247_v7 = vpack.c.b16 %v246_v6, %v246_v6 }
  0x15   : > { %v249_v8 = vshrl.u32 %v247_v7, 16  ;;  %v252_v9 = vshll.u32 %v247_v7, 16 }
  0x17   : > { %v251_v10 = vrot.slane %v249_v8, 7 }
  0x19   : > { %v254_v11 = vor.u32 %v252_v9, %v251_v10 }
  0x1b   : > { %v259_v12 = vsel %vm258_vm4, 0, %v254_v11 }
  0x1c   : > { %442 = vmatmul.msk.bf16.vlgmr.msra.gmra.mxu0 %vm261_vm1, %v259_v12 }
  0x8e   : > { %v297_v13 = vpop.f32.mrf.mxu1 }
  0x96   : > { %v299_v14 = vpop.f32.mrf.mxu1 }
  0x99   : > { %v278_v15 = vpop.f32.mrf.mxu0 }
  0x9a   : > { %v298_v16 = vadd.f32 %v297_v13, %v278_v15 }
  0x9c   : > { %v301_v17 = vpack.c.bf16 %v298_v16, %v298_v16  ;;  %v303_v18 = vrot.slane %v298_v16, 4  ;;  %v310_v19 = vmul.f32 %v298_v16, %v298_v16 }
  0x9e   : > { %302 = vst [vmem:[%s232_s6] sm:$0xf] %v301_v17  ;;  %v304_v20 = vadd.f32 %v303_v18, %v298_v16  ;;  %v311_v21 = vrot.slane %v310_v19, 4 }
  0xa0   : > { %v305_v22 = vrot.slane %v304_v20, 2  ;;  %v312_v23 = vadd.f32 %v311_v21, %v310_v19 }
  0xa1   : > { %v280_v24 = vpop.f32.mrf.mxu0 }
  0xa2   : > { %v306_v25 = vadd.f32 %v305_v22, %v304_v20  ;;  %v313_v26 = vrot.slane %v312_v23, 2 }
  0xa4   : > { %v307_v27 = vrot.slane %v306_v25, 1  ;;  %v314_v28 = vadd.f32 %v313_v26, %v312_v23 }
  0xa6   : > { %v308_v29 = vadd.f32 %v307_v27, %v306_v25  ;;  %v315_v30 = vrot.slane %v314_v28, 1 }
  0xa8   : > { %309 = vst [vmem:[%s236_s9] sm:$0xff] %v308_v29  ;;  %v316_v31 = vadd.f32 %v315_v30, %v314_v28 }
  0xaa   : > { %317 = vst [vmem:[%s240_s12] sm:$0xff] %v316_v31 }
  0xab PF: > { %s16_s18 = sadd.s32 1, %s460_s18  }
  0xac   : > { %p13_p4 = scmp.ge.s32.totalorder %s16_s18, 4  }
  0xae   :  { %15 = sbr.rel (!%p13_p4) target bundleno = 1 (0x1), region = 86 }

// kernel: _lambda_.10
= control target key start
LH: loop header
LB: loop body
LE: loop exit
PB: predicated region body
PF: predicated region fallthrough
CT: control target
= control target key end

     0   :  { %s1027_s24 = smov 0   ;;  %s1161_s0 = inlined_call_operand.vmem [shape: bf16[2,4,256], index: 0, kind: input, shape index: {}]   ;;  %s1162_s1 = inlined_call_operand.vmem [shape: bf16[256,128], index: 1, kind: input, shape index: {}]   ;;  %s1163_s2 = inlined_call_operand.vmem [shape: bf16[256,128], index: 2, kind: input, shape index: {}]   ;;  %s1164_s3 = inlined_call_operand.vmem [shape: f32[1,256], index: 3, kind: input, shape index: {}]   ;;  %s1165_s4 = inlined_call_operand.vmem [shape: f32[1,256], index: 4, kind: input, shape index: {}]   ;;  %s1166_s5 = inlined_call_operand.vmem [shape: bf16[2,4,128], index: 5, kind: output, shape index: {0}]   ;;  %s1167_s6 = inlined_call_operand.vmem [shape: f32[16,128], index: 6, kind: output, shape index: {1}]   ;;  %s1168_s7 = inlined_call_operand.vmem [shape: f32[16,128], index: 7, kind: output, shape index: {2}]  }
   0x1 LB: > { %s798_s25 = sadd.s32 4294967295, %s985_s24   ;;  %p802_p0 = scmp.ge.s32.totalorder %s985_s24, 1  ;;  %s985_s24 = sphi %s1027_s24, %s18_s24  }
   0x2   : > { %p242_p1 = scmp.lt.s32.totalorder %s985_s24, 3 }
   0x4   : > { %p243_p2 = pnand %p802_p0, %p242_p1 }
   0x5   : > { %p281_p3 = scmp.lt.s32.totalorder (!%p243_p2), %s798_s25, 1 }
   0x6   : > { %246 = sbr.rel (%p243_p2) target bundleno = 202 (0xca), region = 40 }
   0xb   : > { %v946_v0 = vld [vmem:[%s1162_s1 + $0x38] sm:$0xff]  ;;  %v945_v4 = vld [vmem:[%s1162_s1 + $0x30] sm:$0xff]  ;;  %s1170_s25 = smov (!%p281_p3, %s798_s25), 1  ;;  %v944_v8 = vld [vmem:[%s1162_s1 + $0x28] sm:$0xff]  ;;  %vm306_vm0 = vcmask 1043456   ;;  %vm381_vm2 = vcmask 1040384  }
   0xc   : > { %v954_v1 = vld [vmem:[%s1162_s1 + $0x78] sm:$0xff]  ;;  %638 = vmatpush.bf16.msra.mxu2 %v946_v0  ;;  %v953_v5 = vld [vmem:[%s1162_s1 + $0x70] sm:$0xff]  ;;  %s938_s19 = sshll.u32 %s1170_s25, 2  ;;  %v952_v9 = vld [vmem:[%s1162_s1 + $0x68] sm:$0xff]  ;;  %vm382_vm3 = vsmask.f32 256 }
   0xd   : > { %v962_v2 = vld [vmem:[%s1163_s2 + $0x38] sm:$0xff]  ;;  %651 = vmatpush.bf16.msra.mxu3 %v954_v1  ;;  %v961_v6 = vld [vmem:[%s1163_s2 + $0x30] sm:$0xff]  ;;  %v960_v10 = vld [vmem:[%s1163_s2 + $0x28] sm:$0xff]  ;;  %s285_s9 = scalar_lea.vmem %s1161_s0, %s938_s19  ;;  %s805_s12 = sshll.u32 %s1170_s25, 1 }
   0xe   : > { %v970_v3 = vld [vmem:[%s1163_s2 + $0x78] sm:$0xff]  ;;  %514 = vmatpush.bf16.msra.mxu0 %v962_v2  ;;  %v969_v7 = vld [vmem:[%s1163_s2 + $0x70] sm:$0xff]  ;;  %v968_v11 = vld [vmem:[%s1163_s2 + $0x68] sm:$0xff]  ;;  %s289_s15 = scalar_lea.vmem %s1166_s5, %s805_s12  ;;  %s806_s16 = sshll.u32 %s1170_s25, 3 }
   0xf   : > { %527 = vmatpush.bf16.msra.mxu1 %v970_v3  ;;  %v943_v12 = vld [vmem:[%s1162_s1 + $0x20] sm:$0xff]  ;;  %v942_v24 = vld [vmem:[%s1162_s1 + $0x18] sm:$0xff]  ;;  %v941_v33 = vld [vmem:[%s1162_s1 + $0x10] sm:$0xff]  ;;  %s293_s19 = scalar_lea.vmem %s1167_s6, %s806_s16  ;;  %s297_s22 = scalar_lea.vmem %s1168_s7, %s806_s16 }
  0x10   : > { %639 = vmatpush.bf16.msra.mxu2 %v945_v4  ;;  %v951_v13 = vld [vmem:[%s1162_s1 + $0x60] sm:$0xff]  ;;  %v950_v25 = vld [vmem:[%s1162_s1 + $0x58] sm:$0xff]  ;;  %v949_v34 = vld [vmem:[%s1162_s1 + $0x50] sm:$0xff] }
  0x11   : > { %652 = vmatpush.bf16.msra.mxu3 %v953_v5  ;;  %v959_v14 = vld [vmem:[%s1163_s2 + $0x20] sm:$0xff]  ;;  %v958_v28 = vld [vmem:[%s1163_s2 + $0x18] sm:$0xff]  ;;  %v957_v35 = vld [vmem:[%s1163_s2 + $0x10] sm:$0xff] }
  0x12   : > { %515 = vmatpush.bf16.msra.mxu0 %v961_v6  ;;  %v299_v15 = vld [vmem:[%s285_s9] sm:$0xf]  ;;  %v966_v29 = vld [vmem:[%s1163_s2 + $0x58] sm:$0xff]  ;;  %v965_v36 = vld [vmem:[%s1163_s2 + $0x50] sm:$0xff] }
  0x13   : > { %528 = vmatpush.bf16.msra.mxu1 %v969_v7  ;;  %v967_v16 = vld [vmem:[%s1163_s2 + $0x60] sm:$0xff]  ;;  %v300_v23 = vunpack.c.l.bf16 %v299_v15  ;;  %v940_v39 = vld [vmem:[%s1162_s1 + $0x8] sm:$0xff]  ;;  %vm383_vm4 = vmand %vm381_vm2, %vm382_vm3 }
  0x14   : > { %640 = vmatpush.bf16.msra.mxu2 %v944_v8  ;;  %v301_v17 = vld [vmem:[%s1164_s3] sm:$0x3]  ;;  %v948_v40 = vld [vmem:[%s1162_s1 + $0x48] sm:$0xff] }
  0x15   : > { %653 = vmatpush.bf16.msra.mxu3 %v952_v9  ;;  %v310_v18 = vld [vmem:[%s1165_s4] sm:$0x3]  ;;  %v303_v19 = vperm.slane %v301_v17, 0  ;;  %v304_v20 = vperm.slane %v301_v17, 1  ;;  %v956_v41 = vld [vmem:[%s1163_s2 + $0x8] sm:$0xff] }
  0x16   : > { %516 = vmatpush.bf16.msra.mxu0 %v960_v10  ;;  %v312_v21 = vperm.slane %v310_v18, 0  ;;  %v313_v22 = vperm.slane %v310_v18, 1  ;;  %v964_v42 = vld [vmem:[%s1163_s2 + $0x48] sm:$0xff]  ;;  %v939_v44 = vld [vmem:[%s1162_s1] sm:$0xff] }
  0x17   : > { %529 = vmatpush.bf16.msra.mxu1 %v968_v11  ;;  %v305_v26 = vrot.slane %v304_v20, 4  ;;  %v947_v45 = vld [vmem:[%s1162_s1 + $0x40] sm:$0xff] }
  0x18   : > { %641 = vmatpush.bf16.msra.mxu2 %v943_v12  ;;  %v314_v27 = vrot.slane %v313_v22, 4  ;;  %v955_v46 = vld [vmem:[%s1163_s2] sm:$0xff] }
  0x19   : > { %654 = vmatpush.bf16.msra.mxu3 %v951_v13  ;;  %v307_v30 = vsel %vm306_vm0, %v303_v19, %v305_v26  ;;  %v963_v47 = vld [vmem:[%s1163_s2 + $0x40] sm:$0xff] }
  0x1a   : > { %517 = vmatpush.bf16.msra.mxu0 %v959_v14  ;;  %v315_v31 = vsel %vm306_vm0, %v312_v21, %v314_v27  ;;  %v309_v32 = vmul.f32 %v307_v30, %v300_v23 }
  0x1b   : > { %530 = vmatpush.bf16.msra.mxu1 %v967_v16 }
  0x1c   : > { %642 = vmatpush.bf16.msra.mxu2 %v942_v24  ;;  %v317_v37 = vadd.f32 %v315_v31, %v309_v32 }
  0x1d   : > { %655 = vmatpush.bf16.msra.mxu3 %v950_v25 }
  0x1e   : > { %518 = vmatpush.bf16.msra.mxu0 %v958_v28  ;;  %vm318_vm1 = vcmp.ge.f32.partialorder %v317_v37, 0.0  ;;  %v319_v38 = vmul.f32 0.01, %v317_v37 }
  0x1f   : > { %531 = vmatpush.bf16.msra.mxu1 %v966_v29 }
  0x20   : > { %643 = vmatpush.bf16.msra.mxu2 %v941_v33  ;;  %v320_v43 = vsel %vm318_vm1, %v317_v37, %v319_v38 }
  0x21   : > { %656 = vmatpush.bf16.msra.mxu3 %v949_v34  ;;  %322 = vst [vmem:[#allocation1] ss:$2 sm:$0xff] %v320_v43 }
  0x22   : > { %519 = vmatpush.bf16.msra.mxu0 %v957_v35 }
  0x23   : > { %532 = vmatpush.bf16.msra.mxu1 %v965_v36 }
  0x24   : > { %644 = vmatpush.bf16.msra.mxu2 %v940_v39 }
  0x25   : > { %657 = vmatpush.bf16.msra.mxu3 %v948_v40 }
  0x26   : > { %520 = vmatpush.bf16.msra.mxu0 %v956_v41 }
  0x27   : > { %533 = vmatpush.bf16.msra.mxu1 %v964_v42 }
  0x28   : > { %645 = vmatpush.bf16.msra.mxu2 %v939_v44  ;;  %v323_v48 = vld.sshfl [vmem:[#allocation1] sm:$0xff pattern:$0x75316420]  ;;  %v324_v49 = vld.sshfl [vmem:[#allocation1 + $0x8] sm:$0xff pattern:$0x75316420] }
  0x29   : > { %658 = vmatpush.bf16.msra.mxu3 %v947_v45  ;;  %v327_v50 = vpack.c.bf16 %v324_v49, %v323_v48 }
  0x2a   : > { %521 = vmatpush.bf16.msra.mxu0 %v955_v46 }
  0x2b   : > { %534 = vmatpush.bf16.msra.mxu1 %v963_v47  ;;  %v361_v51 = vunpack.c.l.b16 %v327_v50  ;;  %v362_v52 = vunpack.c.h.b16 %v327_v50 }
  0x2d   : > { %v363_v53 = vpack.c.b16 %v361_v51, %v361_v51  ;;  %v364_v54 = vpack.c.b16 %v362_v52, %v362_v52 }
  0x2f   : > { %646 = vmatmul.bf16.vlgmr.msra.gmra.mxu2 %v363_v53  ;;  %659 = vmatmul.bf16.vlgmr.msra.gmra.mxu3 %v364_v54  ;;  %v366_v55 = vshrl.u32 %v363_v53, 16  ;;  %v369_v56 = vshll.u32 %v363_v53, 16  ;;  %v373_v57 = vshrl.u32 %v364_v54, 16  ;;  %v376_v58 = vshll.u32 %v364_v54, 16 }
  0x31   : > { %v368_v59 = vrot.slane %v366_v55, 7  ;;  %v375_v60 = vrot.slane %v373_v57, 7 }
  0x33   : > { %v371_v61 = vor.u32 %v369_v56, %v368_v59  ;;  %v378_v62 = vor.u32 %v376_v58, %v375_v60 }
  0x35   : > { %v384_v63 = vsel %vm383_vm4, 0, %v371_v61  ;;  %v385_v0 = vsel %vm383_vm4, 0, %v378_v62 }
  0x36   : > { %522 = vmatmul.bf16.vlgmr.msra.gmra.mxu0 %v384_v63  ;;  %535 = vmatmul.bf16.vlgmr.msra.gmra.mxu1 %v385_v0 }
  0xb2   : > { %v647_v1 = vpop.f32.mrf.mxu2  ;;  %v660_v2 = vpop.f32.mrf.mxu3 }
  0xb3   : > { %v523_v3 = vpop.f32.mrf.mxu0  ;;  %v536_v4 = vpop.f32.mrf.mxu1 }
  0xb4   : > { %v537_v5 = vadd.f32 %v536_v4, %v523_v3 }
  0xb6   : > { %v648_v6 = vadd.f32 %v647_v1, %v537_v5 }
  0xb8   : > { %v661_v7 = vadd.f32 %v660_v2, %v648_v6 }
  0xba   : > { %v664_v8 = vpack.c.bf16 %v661_v7, %v661_v7  ;;  %v666_v9 = vsel %vm306_vm0, %v661_v7, 0.0  ;;  %v674_v10 = vmul.f32 %v661_v7, %v661_v7  ;;  %v649_v11 = vpop.f32.mrf.mxu2  ;;  %v662_v12 = vpop.f32.mrf.mxu3 }
  0xbb   : > { %v667_v13 = vrot.slane %v666_v9, 4  ;;  %v525_v14 = vpop.f32.mrf.mxu0  ;;  %v538_v15 = vpop.f32.mrf.mxu1 }
  0xbc   : > { %665 = vst [vmem:[%s289_s15] sm:$0x3] %v664_v8  ;;  %v675_v16 = vsel %vm306_vm0, %v674_v10, 0.0 }
  0xbd   : > { %v668_v17 = vadd.f32 %v667_v13, %v666_v9  ;;  %v676_v18 = vrot.slane %v675_v16, 4 }
  0xbf   : > { %v669_v19 = vrot.slane %v668_v17, 2  ;;  %v677_v20 = vadd.f32 %v676_v18, %v675_v16 }
  0xc1   : > { %v670_v21 = vadd.f32 %v669_v19, %v668_v17  ;;  %v678_v22 = vrot.slane %v677_v20, 2 }
  0xc3   : > { %v671_v23 = vrot.slane %v670_v21, 1  ;;  %v679_v24 = vadd.f32 %v678_v22, %v677_v20 }
  0xc5   : > { %v672_v25 = vadd.f32 %v671_v23, %v670_v21  ;;  %v680_v26 = vrot.slane %v679_v24, 1 }
  0xc7   : > { %673 = vst [vmem:[%s293_s19] sm:$0xff] %v672_v25  ;;  %v681_v27 = vadd.f32 %v680_v26, %v679_v24 }
  0xc9   : > { %682 = vst [vmem:[%s297_s22] sm:$0xff] %v681_v27 }
  0xca PF: > { %s18_s24 = sadd.s32 1, %s985_s24  }
  0xcb   : > { %p15_p4 = scmp.ge.s32.totalorder %s18_s24, 4  }
  0xcd   :  { %17 = sbr.rel (!%p15_p4) target bundleno = 1 (0x1), region = 94 }

// kernel: _lambda_.11
= control target key start
LH: loop header
LB: loop body
LE: loop exit
PB: predicated region body
PF: predicated region fallthrough
CT: control target
= control target key end

     0   :  { %vm31_vm0 = vcmask 1041408   ;;  %vm33_vm1 = vcmask 1045508   ;;  %vm35_vm2 = vcmask 1043456   ;;  %s695_s1 = inlined_call_operand.vmem [shape: bf16[512,128], index: 1, kind: input, shape index: {}]   ;;  %s696_s0 = inlined_call_operand.vmem [shape: bf16[2,512], index: 0, kind: input, shape index: {}]   ;;  %s697_s2 = inlined_call_operand.vmem [shape: f32[1,512], index: 2, kind: input, shape index: {}]   ;;  %s698_s3 = inlined_call_operand.vmem [shape: f32[1,512], index: 3, kind: input, shape index: {}]   ;;  %s699_s4 = inlined_call_operand.vmem [shape: f32[1,128], index: 4, kind: input, shape index: {}]   ;;  %s700_s5 = inlined_call_operand.vmem [shape: f32[2,128], index: 5, kind: output, shape index: {}]  }
   0x1   :  { %v522_v0 = vld [vmem:[%s695_s1 + $0x38] sm:$0xff]  ;;  %v521_v4 = vld [vmem:[%s695_s1 + $0x30] sm:$0xff]  ;;  %v520_v8 = vld [vmem:[%s695_s1 + $0x28] sm:$0xff] }
   0x2   :  { %v530_v1 = vld [vmem:[%s695_s1 + $0x78] sm:$0xff]  ;;  %330 = vmatpush.bf16.msra.mxu0 %v522_v0  ;;  %v529_v5 = vld [vmem:[%s695_s1 + $0x70] sm:$0xff]  ;;  %v528_v9 = vld [vmem:[%s695_s1 + $0x68] sm:$0xff] }
   0x3   :  { %v538_v2 = vld [vmem:[%s695_s1 + $0xb8] sm:$0xff]  ;;  %343 = vmatpush.bf16.msra.mxu1 %v530_v1  ;;  %v537_v6 = vld [vmem:[%s695_s1 + $0xb0] sm:$0xff]  ;;  %v536_v10 = vld [vmem:[%s695_s1 + $0xa8] sm:$0xff] }
   0x4   :  { %v546_v3 = vld [vmem:[%s695_s1 + $0xf8] sm:$0xff]  ;;  %356 = vmatpush.bf16.msra.mxu2 %v538_v2  ;;  %v545_v7 = vld [vmem:[%s695_s1 + $0xf0] sm:$0xff]  ;;  %v544_v11 = vld [vmem:[%s695_s1 + $0xe8] sm:$0xff] }
   0x5   :  { %369 = vmatpush.bf16.msra.mxu3 %v546_v3  ;;  %v519_v12 = vld [vmem:[%s695_s1 + $0x20] sm:$0xff]  ;;  %v518_v27 = vld [vmem:[%s695_s1 + $0x18] sm:$0xff]  ;;  %v517_v43 = vld [vmem:[%s695_s1 + $0x10] sm:$0xff] }
   0x6   :  { %331 = vmatpush.bf16.msra.mxu0 %v521_v4  ;;  %v527_v13 = vld [vmem:[%s695_s1 + $0x60] sm:$0xff]  ;;  %v526_v28 = vld [vmem:[%s695_s1 + $0x58] sm:$0xff]  ;;  %v525_v44 = vld [vmem:[%s695_s1 + $0x50] sm:$0xff] }
   0x7   :  { %344 = vmatpush.bf16.msra.mxu1 %v529_v5  ;;  %v535_v14 = vld [vmem:[%s695_s1 + $0xa0] sm:$0xff]  ;;  %v534_v33 = vld [vmem:[%s695_s1 + $0x98] sm:$0xff]  ;;  %v533_v47 = vld [vmem:[%s695_s1 + $0x90] sm:$0xff] }
   0x8   :  { %357 = vmatpush.bf16.msra.mxu2 %v537_v6  ;;  %v543_v15 = vld [vmem:[%s695_s1 + $0xe0] sm:$0xff]  ;;  %v542_v34 = vld [vmem:[%s695_s1 + $0xd8] sm:$0xff]  ;;  %v541_v48 = vld [vmem:[%s695_s1 + $0xd0] sm:$0xff] }
   0x9   :  { %370 = vmatpush.bf16.msra.mxu3 %v545_v7  ;;  %v20_v16 = vld [vmem:[%s696_s0] sm:$0xf]  ;;  %v516_v50 = vld [vmem:[%s695_s1 + $0x8] sm:$0xff] }
   0xa   :  { %332 = vmatpush.bf16.msra.mxu0 %v520_v8  ;;  %v22_v17 = vld [vmem:[%s697_s2] sm:$0xf]  ;;  %v21_v29 = vunpack.c.l.bf16 %v20_v16  ;;  %v524_v51 = vld [vmem:[%s695_s1 + $0x48] sm:$0xff] }
   0xb   :  { %345 = vmatpush.bf16.msra.mxu1 %v528_v9  ;;  %v39_v18 = vld [vmem:[%s698_s3] sm:$0xf]  ;;  %v24_v19 = vperm.slane %v22_v17, 0  ;;  %v25_v20 = vperm.slane %v22_v17, 1  ;;  %v26_v21 = vperm.slane %v22_v17, 2  ;;  %v27_v22 = vperm.slane %v22_v17, 3 }
   0xc   :  { %358 = vmatpush.bf16.msra.mxu2 %v536_v10  ;;  %v41_v23 = vperm.slane %v39_v18, 0  ;;  %v42_v24 = vperm.slane %v39_v18, 1  ;;  %v43_v25 = vperm.slane %v39_v18, 2  ;;  %v44_v26 = vperm.slane %v39_v18, 3  ;;  %v532_v53 = vld [vmem:[%s695_s1 + $0x88] sm:$0xff]  ;;  %v515_v56 = vld [vmem:[%s695_s1] sm:$0xff] }
   0xd   :  { %371 = vmatpush.bf16.msra.mxu3 %v544_v11  ;;  %v28_v30 = vrot.slane %v25_v20, 6  ;;  %v29_v31 = vrot.slane %v26_v21, 4  ;;  %v30_v32 = vrot.slane %v27_v22, 2  ;;  %v540_v54 = vld [vmem:[%s695_s1 + $0xc8] sm:$0xff]  ;;  %v523_v57 = vld [vmem:[%s695_s1 + $0x40] sm:$0xff] }
   0xe   :  { %333 = vmatpush.bf16.msra.mxu0 %v519_v12  ;;  %v45_v35 = vrot.slane %v42_v24, 6  ;;  %v46_v36 = vrot.slane %v43_v25, 4  ;;  %v47_v37 = vrot.slane %v44_v26, 2  ;;  %v531_v58 = vld [vmem:[%s695_s1 + $0x80] sm:$0xff] }
   0xf   :  { %346 = vmatpush.bf16.msra.mxu1 %v527_v13  ;;  %v32_v38 = vsel %vm31_vm0, %v24_v19, %v28_v30  ;;  %v34_v39 = vsel %vm33_vm1, %v29_v31, %v30_v32  ;;  %v539_v59 = vld [vmem:[%s695_s1 + $0xc0] sm:$0xff] }
  0x10   :  { %359 = vmatpush.bf16.msra.mxu2 %v535_v14  ;;  %v36_v40 = vsel %vm35_vm2, %v32_v38, %v34_v39  ;;  %v48_v41 = vsel %vm31_vm0, %v41_v23, %v45_v35  ;;  %v49_v42 = vsel %vm33_vm1, %v46_v36, %v47_v37  ;;  %v547_v4 = vld [vmem:[%s699_s4] ss:$0 sm:$0xff] }
  0x11   :  { %372 = vmatpush.bf16.msra.mxu3 %v543_v15  ;;  %v38_v45 = vmul.f32 %v36_v40, %v21_v29  ;;  %v50_v46 = vsel %vm35_vm2, %v48_v41, %v49_v42 }
  0x12   :  { %334 = vmatpush.bf16.msra.mxu0 %v518_v27 }
  0x13   :  { %347 = vmatpush.bf16.msra.mxu1 %v526_v28  ;;  %v52_v49 = vadd.f32 %v50_v46, %v38_v45 }
  0x14   :  { %360 = vmatpush.bf16.msra.mxu2 %v534_v33 }
  0x15   :  { %373 = vmatpush.bf16.msra.mxu3 %v542_v34  ;;  %vm53_vm3 = vcmp.ge.f32.partialorder %v52_v49, 0.0  ;;  %v54_v52 = vmul.f32 0.01, %v52_v49 }
  0x16   :  { %335 = vmatpush.bf16.msra.mxu0 %v517_v43 }
  0x17   :  { %348 = vmatpush.bf16.msra.mxu1 %v525_v44  ;;  %v55_v55 = vsel %vm53_vm3, %v52_v49, %v54_v52 }
  0x18   :  { %361 = vmatpush.bf16.msra.mxu2 %v533_v47  ;;  %57 = vst [vmem:[#allocation1] ss:$4 sm:$0xff] %v55_v55 }
  0x19   :  { %374 = vmatpush.bf16.msra.mxu3 %v541_v48 }
  0x1a   :  { %336 = vmatpush.bf16.msra.mxu0 %v516_v50 }
  0x1b   :  { %349 = vmatpush.bf16.msra.mxu1 %v524_v51 }
  0x1c   :  { %362 = vmatpush.bf16.msra.mxu2 %v532_v53 }
  0x1d   :  { %375 = vmatpush.bf16.msra.mxu3 %v540_v54 }
  0x1e   :  { %337 = vmatpush.bf16.msra.mxu0 %v515_v56 }
  0x1f   :  { %350 = vmatpush.bf16.msra.mxu1 %v523_v57  ;;  %v58_v60 = vld.sshfl [vmem:[#allocation1] sm:$0xff pattern:$0x73625140]  ;;  %v59_v61 = vld.sshfl [vmem:[#allocation1 + $0x8] sm:$0xff pattern:$0x73625140] }
  0x20   :  { %363 = vmatpush.bf16.msra.mxu2 %v531_v58  ;;  %v66_v62 = vpack.c.bf16 %v58_v60, %v58_v60  ;;  %v67_v63 = vpack.c.bf16 %v59_v61, %v59_v61  ;;  %v60_v0 = vld.sshfl [vmem:[#allocation1 + $0x10] sm:$0xff pattern:$0x73625140]  ;;  %v61_v1 = vld.sshfl [vmem:[#allocation1 + $0x18] sm:$0xff pattern:$0x73625140] }
  0x21   :  { %376 = vmatpush.bf16.msra.mxu3 %v539_v59  ;;  %v68_v2 = vpack.c.bf16 %v60_v0, %v60_v0  ;;  %v69_v3 = vpack.c.bf16 %v61_v1, %v61_v1 }
  0x22   :  { %338 = vmatmul.bf16.vlgmr.msra.gmra.mxu0 %v66_v62  ;;  %351 = vmatmul.bf16.vlgmr.msra.gmra.mxu1 %v67_v63 }
  0x23   :  { %364 = vmatmul.bf16.vlgmr.msra.gmra.mxu2 %v68_v2 }
  0x24   :  { %377 = vmatmul.bf16.vlgmr.msra.gmra.mxu3 %v69_v3 }
  0x9f   :  { %v339_v5 = vpop.f32.mrf.mxu0  ;;  %v352_v6 = vpop.f32.mrf.mxu1 }
  0xa0   :  { %v340_v7 = vadd.f32 %v547_v4, %v339_v5 }
  0xa2   :  { %v353_v8 = vadd.f32 %v352_v6, %v340_v7 }
  0xa6   :  { %v365_v9 = vpop.f32.mrf.mxu2 }
  0xa7   :  { %v378_v10 = vpop.f32.mrf.mxu3  ;;  %v366_v11 = vadd.f32 %v365_v9, %v353_v8  ;;  %v341_v12 = vpop.f32.mrf.mxu0 }
  0xa8   :  { %v354_v13 = vpop.f32.mrf.mxu1 }
  0xa9   :  { %v379_v14 = vadd.f32 %v378_v10, %v366_v11 }
  0xab   :  { %382 = vst [vmem:[%s700_s5] sm:$0x3] %v379_v14 }
  0xae   :  { %v367_v15 = vpop.f32.mrf.mxu2 }
  0xaf   :  { %v380_v16 = vpop.f32.mrf.mxu3 }

// kernel: _lambda_.12
= control target key start
LH: loop header
LB: loop body
LE: loop exit
PB: predicated region body
PF: predicated region fallthrough
CT: control target
= control target key end

     0   :  { %vm43_vm0 = vcmask 1043456   ;;  %vm39_vm1 = vcmask 64512   ;;  %vm115_vm2 = vcmask 1040384   ;;  %vm119_vm3 = vcmask 1042434   ;;  %s170_s1 = inlined_call_operand.vmem [shape: bf16[8,512], index: 1, kind: input, shape index: {}]   ;;  %s171_s0 = inlined_call_operand.vmem [shape: f32[2,8], index: 0, kind: input, shape index: {}]   ;;  %s172_s2 = inlined_call_operand.vmem [shape: f32[1,512], index: 2, kind: input, shape index: {}]   ;;  %s173_s3 = inlined_call_operand.vmem [shape: bf16[2,512], index: 3, kind: output, shape index: {}]  }
   0x1   :  { %v17_v0 = vld [vmem:[%s170_s1] sm:$0xff]  ;;  %v18_v1 = vld [vmem:[%s170_s1 + $0x8] sm:$0xff]  ;;  %vm123_vm4 = vcmask 1041408  }
   0x2   :  { %v31_v2 = vunpack.c.l.b16 %v17_v0  ;;  %v32_v3 = vunpack.c.h.b16 %v17_v0  ;;  %v33_v4 = vunpack.c.l.b16 %v18_v1  ;;  %v34_v5 = vunpack.c.h.b16 %v18_v1  ;;  %v15_v6 = vld [vmem:[%s171_s0] sm:$0x3] }
   0x3   :  { %v16_v11 = vpack.c.bf16 %v15_v6, %v15_v6  ;;  %v19_v16 = vld [vmem:[%s172_s2] sm:$0xf] }
   0x4   :  { %v35_v7 = vpack.c.b16 %v31_v2, %v31_v2  ;;  %v36_v8 = vpack.c.b16 %v32_v3, %v32_v3  ;;  %v37_v9 = vpack.c.b16 %v33_v4, %v33_v4  ;;  %v38_v10 = vpack.c.b16 %v34_v5, %v34_v5 }
   0x5   :  { %v21_v17 = vperm.slane %v19_v16, 0  ;;  %v22_v18 = vperm.slane %v19_v16, 1  ;;  %v23_v23 = vperm.slane %v19_v16, 2  ;;  %v24_v24 = vperm.slane %v19_v16, 3 }
   0x6   :  { %v45_v12 = vsel %vm43_vm0, %v35_v7, 0  ;;  %v48_v13 = vsel %vm43_vm0, %v36_v8, 0  ;;  %v51_v14 = vsel %vm43_vm0, %v37_v9, 0  ;;  %v54_v15 = vsel %vm43_vm0, %v38_v10, 0 }
   0x7   :  { %63 = vmatpush.bf16.msra.mxu0 %v45_v12  ;;  %76 = vmatpush.bf16.msra.mxu1 %v48_v13 }
   0x8   :  { %89 = vmatpush.bf16.msra.mxu2 %v51_v14  ;;  %102 = vmatpush.bf16.msra.mxu3 %v54_v15 }
   0xa   :  { %131 = vmatmul.msk.bf16.vlgmr.msra.gmra.mxu0 %vm39_vm1, %v16_v11  ;;  %132 = vmatmul.msk.bf16.vlgmr.msra.gmra.mxu1 %vm39_vm1, %v16_v11 }
   0xb   :  { %133 = vmatmul.msk.bf16.vlgmr.msra.gmra.mxu2 %vm39_vm1, %v16_v11  ;;  %134 = vmatmul.msk.bf16.vlgmr.msra.gmra.mxu3 %vm39_vm1, %v16_v11 }
  0x87   :  { %v65_v19 = vpop.f32.mrf.mxu0  ;;  %v78_v20 = vpop.f32.mrf.mxu1 }
  0x88   :  { %v66_v21 = vadd.f32 %v65_v19, %v21_v17  ;;  %v79_v22 = vadd.f32 %v78_v20, %v22_v18 }
  0x8a   :  { %v108_v25 = vpack.c.bf16 %v79_v22, %v66_v21 }
  0x8c   :  { %v112_v32 = vrot.slane %v108_v25, 3 }
  0x8e   :  { %v91_v26 = vpop.f32.mrf.mxu2  ;;  %v104_v27 = vpop.f32.mrf.mxu3  ;;  %v118_v36 = vsel %vm115_vm2, %v108_v25, %v112_v32 }
  0x8f   :  { %v92_v28 = vadd.f32 %v91_v26, %v23_v23  ;;  %v105_v29 = vadd.f32 %v104_v27, %v24_v24  ;;  %v67_v30 = vpop.f32.mrf.mxu0  ;;  %v80_v31 = vpop.f32.mrf.mxu1 }
  0x91   :  { %v109_v33 = vpack.c.bf16 %v105_v29, %v92_v28 }
  0x93   :  { %v113_v34 = vrot.slane %v109_v33, 6  ;;  %v114_v35 = vrot.slane %v109_v33, 1 }
  0x95   :  { %v122_v37 = vsel %vm119_vm3, %v113_v34, %v114_v35 }
  0x96   :  { %v124_v38 = vsel %vm123_vm4, %v118_v36, %v122_v37  ;;  %v93_v39 = vpop.f32.mrf.mxu2  ;;  %v106_v40 = vpop.f32.mrf.mxu3 }
  0x97   :  { %126 = vst [vmem:[%s173_s3] sm:$0xf] %v124_v38 }

// kernel: _lambda_.15
= control target key start
LH: loop header
LB: loop body
LE: loop exit
PB: predicated region body
PF: predicated region fallthrough
CT: control target
= control target key end

     0   :  { %s1318_s18 = smov 0   ;;  %s1752_s0 = inlined_call_operand.vmem [shape: bf16[2,4,256], index: 0, kind: input, shape index: {}]   ;;  %s1753_s1 = inlined_call_operand.vmem [shape: bf16[256,256], index: 1, kind: input, shape index: {}]   ;;  %s1754_s2 = inlined_call_operand.vmem [shape: bf16[256,256], index: 2, kind: input, shape index: {}]   ;;  %s1755_s3 = inlined_call_operand.vmem [shape: bf16[2,4,256], index: 3, kind: output, shape index: {0}]   ;;  %s1756_s4 = inlined_call_operand.vmem [shape: f32[16,256], index: 4, kind: output, shape index: {1}]   ;;  %s1757_s5 = inlined_call_operand.vmem [shape: f32[16,256], index: 5, kind: output, shape index: {2}]  }
   0x1 LB: > { %s933_s19 = sadd.s32 4294967295, %s1286_s18   ;;  %p937_p0 = scmp.ge.s32.totalorder %s1286_s18, 1  ;;  %s1286_s18 = sphi %s1318_s18, %s16_s18  }
   0x2   : > { %p192_p1 = scmp.lt.s32.totalorder %s1286_s18, 3 }
   0x4   : > { %p193_p2 = pnand %p937_p0, %p192_p1 }
   0x5   : > { %p230_p3 = scmp.lt.s32.totalorder (!%p193_p2), %s933_s19, 1 }
   0x6   : > { %196 = sbr.rel (%p193_p2) target bundleno = 231 (0xe7), region = 32 }
   0xb   : > { %v1004_v0 = vld [vmem:[%s1754_s2 + $0x70] sm:$0xf]  ;;  %v1255_v1 = vld [vmem:[%s1754_s2 + $0x74] sm:$0xf0]  ;;  %v1254_v5 = vld [vmem:[%s1754_s2 + $0x74] sm:$0xf] }
   0xc   : > { %v1068_v2 = vld [vmem:[%s1754_s2 + $0xf0] sm:$0xf]  ;;  %v1005_v3 = vor.u32 %v1255_v1, %v1004_v0  ;;  %v1271_v4 = vld [vmem:[%s1754_s2 + $0xf4] sm:$0xf0]  ;;  %v1006_v6 = vld [vmem:[%s1754_s2 + $0x78] sm:$0xf0] }
   0xd   : > { %v1069_v7 = vor.u32 %v1271_v4, %v1068_v2  ;;  %v1009_v8 = vor.u32 %v1254_v5, %v1006_v6  ;;  %v1270_v9 = vld [vmem:[%s1754_s2 + $0xf4] sm:$0xf]  ;;  %v1070_v10 = vld [vmem:[%s1754_s2 + $0xf8] sm:$0xf0]  ;;  %v996_v11 = vld [vmem:[%s1754_s2 + $0x60] sm:$0xf] }
   0xe   : > { %499 = vmatpush.bf16.msra.mxu0 %v1005_v3  ;;  %v1073_v12 = vor.u32 %v1270_v9, %v1070_v10  ;;  %v1253_v13 = vld [vmem:[%s1754_s2 + $0x64] sm:$0xf0]  ;;  %v1060_v14 = vld [vmem:[%s1754_s2 + $0xe0] sm:$0xf]  ;;  %v1252_v18 = vld [vmem:[%s1754_s2 + $0x64] sm:$0xf] }
   0xf   : > { %v1269_v15 = vld [vmem:[%s1754_s2 + $0xe4] sm:$0xf0]  ;;  %512 = vmatpush.bf16.msra.mxu1 %v1069_v7  ;;  %525 = vmatpush.bf16.msra.mxu2 %v1009_v8  ;;  %v997_v16 = vor.u32 %v1253_v13, %v996_v11  ;;  %v998_v19 = vld [vmem:[%s1754_s2 + $0x68] sm:$0xf0]  ;;  %v1268_v20 = vld [vmem:[%s1754_s2 + $0xe4] sm:$0xf] }
  0x10   : > { %v1061_v17 = vor.u32 %v1269_v15, %v1060_v14  ;;  %538 = vmatpush.bf16.msra.mxu3 %v1073_v12  ;;  %v1001_v21 = vor.u32 %v1252_v18, %v998_v19  ;;  %v1062_v22 = vld [vmem:[%s1754_s2 + $0xe8] sm:$0xf0]  ;;  %v988_v23 = vld [vmem:[%s1754_s2 + $0x50] sm:$0xf]  ;;  %v1251_v24 = vld [vmem:[%s1754_s2 + $0x54] sm:$0xf0] }
  0x11   : > { %v1065_v25 = vor.u32 %v1268_v20, %v1062_v22  ;;  %v1052_v26 = vld [vmem:[%s1754_s2 + $0xd0] sm:$0xf]  ;;  %v1267_v27 = vld [vmem:[%s1754_s2 + $0xd4] sm:$0xf0]  ;;  %v1250_v28 = vld [vmem:[%s1754_s2 + $0x54] sm:$0xf]  ;;  %v989_v29 = vor.u32 %v1251_v24, %v988_v23 }
  0x12   : > { %500 = vmatpush.bf16.msra.mxu0 %v997_v16  ;;  %v990_v30 = vld [vmem:[%s1754_s2 + $0x58] sm:$0xf0]  ;;  %v1266_v31 = vld [vmem:[%s1754_s2 + $0xd4] sm:$0xf]  ;;  %v1053_v33 = vor.u32 %v1267_v27, %v1052_v26  ;;  %v980_v35 = vld [vmem:[%s1754_s2 + $0x40] sm:$0xf] }
  0x13   : > { %v1054_v32 = vld [vmem:[%s1754_s2 + $0xd8] sm:$0xf0]  ;;  %513 = vmatpush.bf16.msra.mxu1 %v1061_v17  ;;  %526 = vmatpush.bf16.msra.mxu2 %v1001_v21  ;;  %v993_v34 = vor.u32 %v1250_v28, %v990_v30  ;;  %v1249_v36 = vld [vmem:[%s1754_s2 + $0x44] sm:$0xf0]  ;;  %v1044_v37 = vld [vmem:[%s1754_s2 + $0xc0] sm:$0xf] }
  0x14   : > { %539 = vmatpush.bf16.msra.mxu3 %v1065_v25  ;;  %v1057_v38 = vor.u32 %v1266_v31, %v1054_v32  ;;  %v1265_v39 = vld [vmem:[%s1754_s2 + $0xc4] sm:$0xf0]  ;;  %v1248_v40 = vld [vmem:[%s1754_s2 + $0x44] sm:$0xf]  ;;  %v982_v41 = vld [vmem:[%s1754_s2 + $0x48] sm:$0xf0]  ;;  %v981_v44 = vor.u32 %v1249_v36, %v980_v35 }
  0x15   : > { %v1264_v42 = vld [vmem:[%s1754_s2 + $0xc4] sm:$0xf]  ;;  %v1046_v43 = vld [vmem:[%s1754_s2 + $0xc8] sm:$0xf0]  ;;  %v1045_v45 = vor.u32 %v1265_v39, %v1044_v37  ;;  %v985_v46 = vor.u32 %v1248_v40, %v982_v41  ;;  %v972_v47 = vld [vmem:[%s1754_s2 + $0x30] sm:$0xf] }
  0x16   : > { %501 = vmatpush.bf16.msra.mxu0 %v989_v29  ;;  %v1247_v48 = vld [vmem:[%s1754_s2 + $0x34] sm:$0xf0]  ;;  %v1036_v49 = vld [vmem:[%s1754_s2 + $0xb0] sm:$0xf]  ;;  %v1049_v50 = vor.u32 %v1264_v42, %v1046_v43  ;;  %v1246_v52 = vld [vmem:[%s1754_s2 + $0x34] sm:$0xf] }
  0x17   : > { %514 = vmatpush.bf16.msra.mxu1 %v1053_v33  ;;  %527 = vmatpush.bf16.msra.mxu2 %v993_v34  ;;  %v1263_v51 = vld [vmem:[%s1754_s2 + $0xb4] sm:$0xf0]  ;;  %v974_v53 = vld [vmem:[%s1754_s2 + $0x38] sm:$0xf0]  ;;  %v1262_v54 = vld [vmem:[%s1754_s2 + $0xb4] sm:$0xf]  ;;  %v973_v56 = vor.u32 %v1247_v48, %v972_v47 }
  0x18   : > { %540 = vmatpush.bf16.msra.mxu3 %v1057_v38  ;;  %v1038_v55 = vld [vmem:[%s1754_s2 + $0xb8] sm:$0xf0]  ;;  %v1037_v57 = vor.u32 %v1263_v51, %v1036_v49  ;;  %v977_v58 = vor.u32 %v1246_v52, %v974_v53  ;;  %v964_v59 = vld [vmem:[%s1754_s2 + $0x20] sm:$0xf]  ;;  %v1245_v60 = vld [vmem:[%s1754_s2 + $0x24] sm:$0xf0] }
  0x19   : > { %v1028_v61 = vld [vmem:[%s1754_s2 + $0xa0] sm:$0xf]  ;;  %v1041_v62 = vor.u32 %v1262_v54, %v1038_v55  ;;  %v1261_v63 = vld [vmem:[%s1754_s2 + $0xa4] sm:$0xf0]  ;;  %v1244_v0 = vld [vmem:[%s1754_s2 + $0x24] sm:$0xf]  ;;  %v965_v4 = vor.u32 %v1245_v60, %v964_v59 }
  0x1a   : > { %502 = vmatpush.bf16.msra.mxu0 %v981_v44  ;;  %v966_v1 = vld [vmem:[%s1754_s2 + $0x28] sm:$0xf0]  ;;  %v1260_v2 = vld [vmem:[%s1754_s2 + $0xa4] sm:$0xf]  ;;  %v1029_v5 = vor.u32 %v1261_v63, %v1028_v61  ;;  %v956_v7 = vld [vmem:[%s1754_s2 + $0x10] sm:$0xf] }
  0x1b   : > { %515 = vmatpush.bf16.msra.mxu1 %v1045_v45  ;;  %528 = vmatpush.bf16.msra.mxu2 %v985_v46  ;;  %v1030_v3 = vld [vmem:[%s1754_s2 + $0xa8] sm:$0xf0]  ;;  %v969_v6 = vor.u32 %v1244_v0, %v966_v1  ;;  %v1243_v8 = vld [vmem:[%s1754_s2 + $0x14] sm:$0xf0]  ;;  %v1020_v9 = vld [vmem:[%s1754_s2 + $0x90] sm:$0xf] }
  0x1c   : > { %541 = vmatpush.bf16.msra.mxu3 %v1049_v50  ;;  %v1033_v10 = vor.u32 %v1260_v2, %v1030_v3  ;;  %v1259_v11 = vld [vmem:[%s1754_s2 + $0x94] sm:$0xf0]  ;;  %v1242_v12 = vld [vmem:[%s1754_s2 + $0x14] sm:$0xf]  ;;  %v958_v13 = vld [vmem:[%s1754_s2 + $0x18] sm:$0xf0]  ;;  %v957_v16 = vor.u32 %v1243_v8, %v956_v7 }
  0x1d   : > { %v1258_v14 = vld [vmem:[%s1754_s2 + $0x94] sm:$0xf]  ;;  %v1022_v15 = vld [vmem:[%s1754_s2 + $0x98] sm:$0xf0]  ;;  %v948_v17 = vld [vmem:[%s1754_s2] sm:$0xf]  ;;  %v1021_v20 = vor.u32 %v1259_v11, %v1020_v9  ;;  %v961_v21 = vor.u32 %v1242_v12, %v958_v13 }
  0x1e   : > { %503 = vmatpush.bf16.msra.mxu0 %v973_v56  ;;  %v1241_v18 = vld [vmem:[%s1754_s2 + $0x4] sm:$0xf0]  ;;  %v1012_v19 = vld [vmem:[%s1754_s2 + $0x80] sm:$0xf]  ;;  %v1240_v23 = vld [vmem:[%s1754_s2 + $0x4] sm:$0xf]  ;;  %v1025_v25 = vor.u32 %v1258_v14, %v1022_v15 }
  0x1f   : > { %516 = vmatpush.bf16.msra.mxu1 %v1037_v57  ;;  %529 = vmatpush.bf16.msra.mxu2 %v977_v58  ;;  %v1257_v22 = vld [vmem:[%s1754_s2 + $0x84] sm:$0xf0]  ;;  %v950_v24 = vld [vmem:[%s1754_s2 + $0x8] sm:$0xf0]  ;;  %v1256_v26 = vld [vmem:[%s1754_s2 + $0x84] sm:$0xf]  ;;  %v949_v31 = vor.u32 %v1241_v18, %v948_v17 }
  0x20   : > { %542 = vmatpush.bf16.msra.mxu3 %v1041_v62  ;;  %v1014_v27 = vld [vmem:[%s1754_s2 + $0x88] sm:$0xf0]  ;;  %v1132_v28 = vld [vmem:[%s1753_s1 + $0x70] sm:$0xf]  ;;  %v1223_v29 = vld [vmem:[%s1753_s1 + $0x74] sm:$0xf0]  ;;  %v1013_v35 = vor.u32 %v1257_v22, %v1012_v19  ;;  %v953_v36 = vor.u32 %v1240_v23, %v950_v24 }
  0x21   : > { %v1196_v30 = vld [vmem:[%s1753_s1 + $0xf0] sm:$0xf]  ;;  %v1239_v32 = vld [vmem:[%s1753_s1 + $0xf4] sm:$0xf0]  ;;  %v1222_v33 = vld [vmem:[%s1753_s1 + $0x74] sm:$0xf]  ;;  %v1017_v39 = vor.u32 %v1256_v26, %v1014_v27  ;;  %v1133_v40 = vor.u32 %v1223_v29, %v1132_v28 }
  0x22   : > { %504 = vmatpush.bf16.msra.mxu0 %v965_v4  ;;  %v1134_v34 = vld [vmem:[%s1753_s1 + $0x78] sm:$0xf0]  ;;  %v1238_v37 = vld [vmem:[%s1753_s1 + $0xf4] sm:$0xf]  ;;  %s1761_s19 = smov (!%p230_p3, %s933_s19), 1  ;;  %v1197_v42 = vor.u32 %v1239_v32, %v1196_v30  ;;  %vm302_vm0 = vcmask 1041408  }
  0x23   : > { %517 = vmatpush.bf16.msra.mxu1 %v1029_v5  ;;  %530 = vmatpush.bf16.msra.mxu2 %v969_v6  ;;  %v1198_v38 = vld [vmem:[%s1753_s1 + $0xf8] sm:$0xf0]  ;;  %v1124_v41 = vld [vmem:[%s1753_s1 + $0x60] sm:$0xf]  ;;  %v1137_v43 = vor.u32 %v1222_v33, %v1134_v34  ;;  %v1221_v44 = vld [vmem:[%s1753_s1 + $0x64] sm:$0xf0] }
  0x24   : > { %543 = vmatpush.bf16.msra.mxu3 %v1033_v10  ;;  %v1188_v45 = vld [vmem:[%s1753_s1 + $0xe0] sm:$0xf]  ;;  %s1204_s7 = sshll.u32 %s1761_s19, 2  ;;  %v1201_v46 = vor.u32 %v1238_v37, %v1198_v38  ;;  %v1237_v47 = vld [vmem:[%s1753_s1 + $0xe4] sm:$0xf0]  ;;  %v1125_v53 = vor.u32 %v1221_v44, %v1124_v41  ;;  %vm777_vm3 = vcmask 1043456  }
  0x25   : > { %v1220_v48 = vld [vmem:[%s1753_s1 + $0x64] sm:$0xf]  ;;  %v1126_v49 = vld [vmem:[%s1753_s1 + $0x68] sm:$0xf0]  ;;  %s234_s16 = scalar_lea.vmem %s1752_s0, %s1204_s7  ;;  %v1189_v54 = vor.u32 %v1237_v47, %v1188_v45  ;;  %v1116_v56 = vld [vmem:[%s1753_s1 + $0x50] sm:$0xf]  ;;  %s239_s10 = scalar_lea.vmem %s1755_s3, %s1204_s7 }
  0x26   : > { %505 = vmatpush.bf16.msra.mxu0 %v957_v16  ;;  %v1236_v50 = vld [vmem:[%s1753_s1 + $0xe4] sm:$0xf]  ;;  %v1190_v51 = vld [vmem:[%s1753_s1 + $0xe8] sm:$0xf0]  ;;  %v251_v52 = vld [vmem:[%s234_s16] sm:$0xf]  ;;  %v1129_v55 = vor.u32 %v1220_v48, %v1126_v49 }
  0x27   : > { %518 = vmatpush.bf16.msra.mxu1 %v1021_v20  ;;  %531 = vmatpush.bf16.msra.mxu2 %v961_v21  ;;  %285 = vst [vmem:[#allocation1] ss:$4 sm:$0xff] %v251_v52  ;;  %v1219_v57 = vld [vmem:[%s1753_s1 + $0x54] sm:$0xf0]  ;;  %v1180_v58 = vld [vmem:[%s1753_s1 + $0xd0] sm:$0xf]  ;;  %v1193_v59 = vor.u32 %v1236_v50, %v1190_v51 }
  0x28   : > { %544 = vmatpush.bf16.msra.mxu3 %v1025_v25  ;;  %v1235_v60 = vld [vmem:[%s1753_s1 + $0xd4] sm:$0xf0]  ;;  %v1218_v61 = vld [vmem:[%s1753_s1 + $0x54] sm:$0xf]  ;;  %v1118_v62 = vld [vmem:[%s1753_s1 + $0x58] sm:$0xf0]  ;;  %v1117_v1 = vor.u32 %v1219_v57, %v1116_v56 }
  0x29   : > { %v1234_v63 = vld [vmem:[%s1753_s1 + $0xd4] sm:$0xf]  ;;  %v1182_v0 = vld [vmem:[%s1753_s1 + $0xd8] sm:$0xf0]  ;;  %vm303_vm1 = vsmask.f32 1280  ;;  %v1181_v4 = vor.u32 %v1235_v60, %v1180_v58  ;;  %v1121_v5 = vor.u32 %v1218_v61, %v1118_v62 }
  0x2a   : > { %506 = vmatpush.bf16.msra.mxu0 %v949_v31  ;;  %v1108_v2 = vld [vmem:[%s1753_s1 + $0x40] sm:$0xf]  ;;  %v1217_v3 = vld [vmem:[%s1753_s1 + $0x44] sm:$0xf0]  ;;  %v1216_v8 = vld [vmem:[%s1753_s1 + $0x44] sm:$0xf]  ;;  %v1185_v9 = vor.u32 %v1234_v63, %v1182_v0 }
  0x2b   : > { %519 = vmatpush.bf16.msra.mxu1 %v1013_v35  ;;  %532 = vmatpush.bf16.msra.mxu2 %v953_v36  ;;  %v1172_v6 = vld [vmem:[%s1753_s1 + $0xc0] sm:$0xf]  ;;  %v1233_v7 = vld [vmem:[%s1753_s1 + $0xc4] sm:$0xf0]  ;;  %v1110_v10 = vld [vmem:[%s1753_s1 + $0x48] sm:$0xf0]  ;;  %v1109_v15 = vor.u32 %v1217_v3, %v1108_v2 }
  0x2c   : > { %545 = vmatpush.bf16.msra.mxu3 %v1017_v39  ;;  %v1232_v11 = vld [vmem:[%s1753_s1 + $0xc4] sm:$0xf]  ;;  %v1174_v12 = vld [vmem:[%s1753_s1 + $0xc8] sm:$0xf0]  ;;  %v1173_v20 = vor.u32 %v1233_v7, %v1172_v6  ;;  %v1113_v21 = vor.u32 %v1216_v8, %v1110_v10  ;;  %v1100_v22 = vld [vmem:[%s1753_s1 + $0x30] sm:$0xf] }
  0x2d   : > { %v1215_v23 = vld [vmem:[%s1753_s1 + $0x34] sm:$0xf0]  ;;  %v1164_v24 = vld [vmem:[%s1753_s1 + $0xb0] sm:$0xf]  ;;  %vm1637_vm2 = vmand %vm302_vm0, %vm303_vm1  ;;  %v1177_v28 = vor.u32 %v1232_v11, %v1174_v12  ;;  %s1206_s6 = sshll.u32 %s1761_s19, 4 }
  0x2e   : > { %716 = vmatpush.bf16.msrb.mxu0 %v1133_v40  ;;  %v286_v13 = vld.sshfl [vmem:[#allocation1] sm:$0xff pattern:$0x73625140]  ;;  %v287_v14 = vld.sshfl [vmem:[#allocation1 + $0x8] sm:$0xff pattern:$0x73625140]  ;;  %v1101_v36 = vor.u32 %v1215_v23, %v1100_v22  ;;  %s244_s13 = scalar_lea.vmem %s1756_s4, %s1206_s6  ;;  %s249_s15 = scalar_lea.vmem %s1757_s5, %s1206_s6 }
  0x2f   : > { %729 = vmatpush.bf16.msrb.mxu1 %v1197_v42  ;;  %742 = vmatpush.bf16.msrb.mxu2 %v1137_v43  ;;  %v288_v16 = vshrl.u32 %v286_v13, 16  ;;  %v290_v17 = vshll.u32 %v286_v13, 16  ;;  %v294_v18 = vshrl.u32 %v287_v14, 16  ;;  %v296_v19 = vshll.u32 %v287_v14, 16  ;;  %551 = vst [vmem:[#allocation1] ss:$4 sm:$0xff] %v251_v52 }
  0x30   : > { %755 = vmatpush.bf16.msrb.mxu3 %v1201_v46  ;;  %v1231_v29 = vld [vmem:[%s1753_s1 + $0xb4] sm:$0xf0]  ;;  %v1214_v30 = vld [vmem:[%s1753_s1 + $0x34] sm:$0xf]  ;;  %v1102_v31 = vld [vmem:[%s1753_s1 + $0x38] sm:$0xf0] }
  0x31   : > { %v292_v25 = vrot.slane %v290_v17, 1  ;;  %v298_v27 = vrot.slane %v296_v19, 1  ;;  %v1230_v32 = vld [vmem:[%s1753_s1 + $0xb4] sm:$0xf]  ;;  %v1166_v33 = vld [vmem:[%s1753_s1 + $0xb8] sm:$0xf0]  ;;  %v1165_v37 = vor.u32 %v1231_v29, %v1164_v24  ;;  %v1105_v43 = vor.u32 %v1214_v30, %v1102_v31 }
  0x32   : > { %717 = vmatpush.bf16.msrb.mxu0 %v1125_v53  ;;  %v1092_v38 = vld [vmem:[%s1753_s1 + $0x20] sm:$0xf]  ;;  %v1213_v39 = vld [vmem:[%s1753_s1 + $0x24] sm:$0xf0]  ;;  %v1169_v44 = vor.u32 %v1230_v32, %v1166_v33  ;;  %v1212_v46 = vld [vmem:[%s1753_s1 + $0x24] sm:$0xf] }
  0x33   : > { %730 = vmatpush.bf16.msrb.mxu1 %v1189_v54  ;;  %743 = vmatpush.bf16.msrb.mxu2 %v1129_v55  ;;  %v293_v34 = vor.u32 %v292_v25, %v288_v16  ;;  %v299_v35 = vor.u32 %v298_v27, %v294_v18  ;;  %v1156_v40 = vld [vmem:[%s1753_s1 + $0xa0] sm:$0xf]  ;;  %v1229_v45 = vld [vmem:[%s1753_s1 + $0xa4] sm:$0xf0]  ;;  %v1094_v47 = vld [vmem:[%s1753_s1 + $0x28] sm:$0xf0]  ;;  %v1093_v50 = vor.u32 %v1213_v39, %v1092_v38 }
  0x34   : > { %756 = vmatpush.bf16.msrb.mxu3 %v1193_v59  ;;  %v1228_v48 = vld [vmem:[%s1753_s1 + $0xa4] sm:$0xf]  ;;  %v1158_v49 = vld [vmem:[%s1753_s1 + $0xa8] sm:$0xf0]  ;;  %v1157_v51 = vor.u32 %v1229_v45, %v1156_v40  ;;  %v1084_v52 = vld [vmem:[%s1753_s1 + $0x10] sm:$0xf]  ;;  %v1097_v54 = vor.u32 %v1212_v46, %v1094_v47 }
  0x35   : > { %v305_v41 = vsel %vm1637_vm2, %v293_v34, 0  ;;  %v306_v42 = vsel %vm1637_vm2, %v299_v35, 0  ;;  %v1211_v53 = vld [vmem:[%s1753_s1 + $0x14] sm:$0xf0]  ;;  %v1161_v55 = vor.u32 %v1228_v48, %v1158_v49  ;;  %v1148_v56 = vld [vmem:[%s1753_s1 + $0x90] sm:$0xf] }
  0x36   : > { %718 = vmatpush.bf16.msrb.mxu0 %v1117_v1  ;;  %533 = vmatmul.bf16.vlgmr.msra.gmra.mxu2 %v305_v41  ;;  %v1227_v57 = vld [vmem:[%s1753_s1 + $0x94] sm:$0xf0]  ;;  %v1210_v58 = vld [vmem:[%s1753_s1 + $0x14] sm:$0xf]  ;;  %v1086_v59 = vld [vmem:[%s1753_s1 + $0x18] sm:$0xf0]  ;;  %v1085_v62 = vor.u32 %v1211_v53, %v1084_v52 }
  0x37   : > { %731 = vmatpush.bf16.msrb.mxu1 %v1181_v4  ;;  %744 = vmatpush.bf16.msrb.mxu2 %v1121_v5  ;;  %v1226_v60 = vld [vmem:[%s1753_s1 + $0x94] sm:$0xf]  ;;  %v1150_v61 = vld [vmem:[%s1753_s1 + $0x98] sm:$0xf0]  ;;  %v1149_v63 = vor.u32 %v1227_v57, %v1148_v56  ;;  %v1076_v0 = vld [vmem:[%s1753_s1] sm:$0xf]  ;;  %v1089_v2 = vor.u32 %v1210_v58, %v1086_v59 }
  0x38   : > { %757 = vmatpush.bf16.msrb.mxu3 %v1185_v9  ;;  %507 = vmatmul.bf16.vlgmr.msra.gmra.mxu0 %v305_v41  ;;  %v1209_v1 = vld [vmem:[%s1753_s1 + $0x4] sm:$0xf0]  ;;  %v1153_v3 = vor.u32 %v1226_v60, %v1150_v61  ;;  %v1140_v4 = vld [vmem:[%s1753_s1 + $0x80] sm:$0xf]  ;;  %v1208_v6 = vld [vmem:[%s1753_s1 + $0x4] sm:$0xf] }
  0x39   : > { %546 = vmatmul.bf16.vlgmr.msra.gmra.mxu3 %v306_v42  ;;  %520 = vmatmul.bf16.vlgmr.msra.gmra.mxu1 %v306_v42  ;;  %v1225_v5 = vld [vmem:[%s1753_s1 + $0x84] sm:$0xf0]  ;;  %v1078_v7 = vld [vmem:[%s1753_s1 + $0x8] sm:$0xf0]  ;;  %v1224_v8 = vld [vmem:[%s1753_s1 + $0x84] sm:$0xf]  ;;  %v1077_v10 = vor.u32 %v1209_v1, %v1076_v0 }
  0x3a   : > { %719 = vmatpush.bf16.msrb.mxu0 %v1109_v15  ;;  %v1142_v9 = vld [vmem:[%s1753_s1 + $0x88] sm:$0xf0]  ;;  %v1141_v11 = vor.u32 %v1225_v5, %v1140_v4  ;;  %v1081_v12 = vor.u32 %v1208_v6, %v1078_v7  ;;  %v552_v14 = vld.sshfl [vmem:[#allocation1] sm:$0xff pattern:$0x73625140] }
  0x3b   : > { %732 = vmatpush.bf16.msrb.mxu1 %v1173_v20  ;;  %745 = vmatpush.bf16.msrb.mxu2 %v1113_v21  ;;  %v1145_v13 = vor.u32 %v1224_v8, %v1142_v9  ;;  %v553_v15 = vld.sshfl [vmem:[#allocation1 + $0x8] sm:$0xff pattern:$0x73625140] }
  0x3c   : > { %758 = vmatpush.bf16.msrb.mxu3 %v1177_v28 }
  0x3e   : > { %720 = vmatpush.bf16.msrb.mxu0 %v1101_v36 }
  0x3f   : > { %733 = vmatpush.bf16.msrb.mxu1 %v1165_v37  ;;  %746 = vmatpush.bf16.msrb.mxu2 %v1105_v43 }
  0x40   : > { %759 = vmatpush.bf16.msrb.mxu3 %v1169_v44 }
  0x42   : > { %721 = vmatpush.bf16.msrb.mxu0 %v1093_v50 }
  0x43   : > { %734 = vmatpush.bf16.msrb.mxu1 %v1157_v51  ;;  %747 = vmatpush.bf16.msrb.mxu2 %v1097_v54 }
  0x44   : > { %760 = vmatpush.bf16.msrb.mxu3 %v1161_v55 }
  0x46   : > { %722 = vmatpush.bf16.msrb.mxu0 %v1085_v62 }
  0x47   : > { %735 = vmatpush.bf16.msrb.mxu1 %v1149_v63  ;;  %748 = vmatpush.bf16.msrb.mxu2 %v1089_v2 }
  0x48   : > { %761 = vmatpush.bf16.msrb.mxu3 %v1153_v3 }
  0x4a   : > { %723 = vmatpush.bf16.msrb.mxu0 %v1077_v10 }
  0x4b   : > { %736 = vmatpush.bf16.msrb.mxu1 %v1141_v11  ;;  %749 = vmatpush.bf16.msrb.mxu2 %v1081_v12 }
  0x4c   : > { %762 = vmatpush.bf16.msrb.mxu3 %v1145_v13 }
  0x4d   : > { %724 = vmatmul.bf16.vlgmr.msrb.gmra.mxu0 %v552_v14 }
  0x4e   : > { %737 = vmatmul.bf16.vlgmr.msrb.gmra.mxu1 %v553_v15  ;;  %750 = vmatmul.bf16.vlgmr.msrb.gmra.mxu2 %v552_v14 }
  0x4f   : > { %763 = vmatmul.bf16.vlgmr.msrb.gmra.mxu3 %v553_v15 }
  0xb5   : > { %v508_v16 = vpop.f32.mrf.mxu0 }
  0xb6   : > { %v521_v17 = vpop.f32.mrf.mxu1 }
  0xb7   : > { %v522_v24 = vadd.f32 %v521_v17, %v508_v16 }
  0xb9   : > { %v534_v18 = vpop.f32.mrf.mxu2 }
  0xbc   : > { %v547_v19 = vpop.f32.mrf.mxu3 }
  0xbd   : > { %v510_v20 = vpop.f32.mrf.mxu0  ;;  %v548_v31 = vadd.f32 %v547_v19, %v534_v18 }
  0xbe   : > { %v523_v21 = vpop.f32.mrf.mxu1 }
  0xc1   : > { %v536_v22 = vpop.f32.mrf.mxu2 }
  0xc4   : > { %v549_v23 = vpop.f32.mrf.mxu3 }
  0xca   : > { %v725_v25 = vpop.f32.mrf.mxu0 }
  0xcb   : > { %v738_v26 = vpop.f32.mrf.mxu1  ;;  %v726_v27 = vadd.f32 %v725_v25, %v522_v24 }
  0xcd   : > { %v739_v28 = vadd.f32 %v738_v26, %v726_v27 }
  0xcf   : > { %v778_v29 = vsel %vm777_vm3, %v739_v28, 0.0  ;;  %v794_v30 = vmul.f32 %v739_v28, %v739_v28 }
  0xd0   : > { %v779_v32 = vrot.slane %v778_v29, 4 }
  0xd1   : > { %v796_v33 = vsel %vm777_vm3, %v794_v30, 0.0  ;;  %v751_v34 = vpop.f32.mrf.mxu2 }
  0xd2   : > { %v764_v35 = vpop.f32.mrf.mxu3  ;;  %v780_v36 = vadd.f32 %v779_v32, %v778_v29  ;;  %v797_v37 = vrot.slane %v796_v33, 4  ;;  %v752_v38 = vadd.f32 %v751_v34, %v548_v31  ;;  %v727_v39 = vpop.f32.mrf.mxu0 }
  0xd3   : > { %v740_v40 = vpop.f32.mrf.mxu1 }
  0xd4   : > { %v781_v41 = vrot.slane %v780_v36, 2  ;;  %v798_v42 = vadd.f32 %v797_v37, %v796_v33  ;;  %v765_v43 = vadd.f32 %v764_v35, %v752_v38 }
  0xd6   : > { %v782_v44 = vadd.f32 %v781_v41, %v780_v36  ;;  %v799_v45 = vrot.slane %v798_v42, 2  ;;  %v768_v46 = vpack.c.bf16 %v765_v43, %v739_v28  ;;  %v785_v47 = vsel %vm777_vm3, %v765_v43, 0.0 }
  0xd7   : > { %v786_v48 = vrot.slane %v785_v47, 4  ;;  %v795_v49 = vmul.f32 %v765_v43, %v765_v43 }
  0xd8   : > { %v783_v50 = vrot.slane %v782_v44, 1  ;;  %v800_v51 = vadd.f32 %v799_v45, %v798_v42  ;;  %v770_v52 = vrot.slane %v768_v46, 2 }
  0xd9   : > { %v787_v53 = vadd.f32 %v786_v48, %v785_v47  ;;  %v803_v54 = vsel %vm777_vm3, %v795_v49, 0.0  ;;  %v753_v55 = vpop.f32.mrf.mxu2 }
  0xda   : > { %v766_v56 = vpop.f32.mrf.mxu3  ;;  %v784_v57 = vadd.f32 %v783_v50, %v782_v44  ;;  %v801_v58 = vrot.slane %v800_v51, 1  ;;  %v774_v59 = vsel %vm302_vm0, %v768_v46, %v770_v52  ;;  %v804_v60 = vrot.slane %v803_v54, 4 }
  0xdb   : > { %776 = vst [vmem:[%s239_s10] sm:$0xf] %v774_v59  ;;  %v788_v61 = vrot.slane %v787_v53, 2 }
  0xdc   : > { %792 = vst [vmem:[%s244_s13] sm:$0xff] %v784_v57  ;;  %v802_v62 = vadd.f32 %v801_v58, %v800_v51  ;;  %v805_v63 = vadd.f32 %v804_v60, %v803_v54 }
  0xdd   : > { %v789_v0 = vadd.f32 %v788_v61, %v787_v53 }
  0xde   : > { %810 = vst [vmem:[%s249_s15] sm:$0xff] %v802_v62  ;;  %v806_v1 = vrot.slane %v805_v63, 2 }
  0xdf   : > { %v790_v2 = vrot.slane %v789_v0, 1 }
  0xe0   : > { %v807_v3 = vadd.f32 %v806_v1, %v805_v63 }
  0xe1   : > { %v791_v4 = vadd.f32 %v790_v2, %v789_v0 }
  0xe2   : > { %v808_v5 = vrot.slane %v807_v3, 1 }
  0xe3   : > { %793 = vst [vmem:[%s244_s13 + $0x8] sm:$0xff] %v791_v4 }
  0xe4   : > { %v809_v6 = vadd.f32 %v808_v5, %v807_v3 }
  0xe6   : > { %811 = vst [vmem:[%s249_s15 + $0x8] sm:$0xff] %v809_v6 }
  0xe7 PF: > { %s16_s18 = sadd.s32 1, %s1286_s18  }
  0xe8   : > { %p13_p4 = scmp.ge.s32.totalorder %s16_s18, 4  }
  0xea   :  { %15 = sbr.rel (!%p13_p4) target bundleno = 1 (0x1), region = 86 }

// kernel: _lambda_.16
= control target key start
LH: loop header
LB: loop body
LE: loop exit
PB: predicated region body
PF: predicated region fallthrough
CT: control target
= control target key end

     0   :  { %s965_s24 = smov 0   ;;  %s1195_s0 = inlined_call_operand.vmem [shape: bf16[2,8,128], index: 0, kind: input, shape index: {}]   ;;  %s1196_s1 = inlined_call_operand.vmem [shape: bf16[128,256], index: 1, kind: input, shape index: {}]   ;;  %s1197_s2 = inlined_call_operand.vmem [shape: bf16[128,256], index: 2, kind: input, shape index: {}]   ;;  %s1198_s3 = inlined_call_operand.vmem [shape: f32[1,128], index: 3, kind: input, shape index: {}]   ;;  %s1199_s4 = inlined_call_operand.vmem [shape: f32[1,128], index: 4, kind: input, shape index: {}]   ;;  %s1200_s5 = inlined_call_operand.vmem [shape: bf16[2,8,256], index: 5, kind: output, shape index: {0}]   ;;  %s1201_s6 = inlined_call_operand.vmem [shape: f32[16,256], index: 6, kind: output, shape index: {1}]   ;;  %s1202_s7 = inlined_call_operand.vmem [shape: f32[16,256], index: 7, kind: output, shape index: {2}]  }
   0x1 LB: > { %s730_s25 = sadd.s32 4294967295, %s923_s24   ;;  %p734_p0 = scmp.ge.s32.totalorder %s923_s24, 1  ;;  %s923_s24 = sphi %s965_s24, %s18_s24  }
   0x2   : > { %p241_p1 = scmp.lt.s32.totalorder %s923_s24, 3 }
   0x4   : > { %p242_p2 = pnand %p734_p0, %p241_p1 }
   0x5   : > { %p282_p3 = scmp.lt.s32.totalorder (!%p242_p2), %s730_s25, 1 }
   0x6   : > { %245 = sbr.rel (%p242_p2) target bundleno = 201 (0xc9), region = 40 }
   0xb   : > { %v800_v0 = vld [vmem:[%s1197_s2 + $0x70] sm:$0xf]  ;;  %v906_v1 = vld [vmem:[%s1197_s2 + $0x74] sm:$0xf0]  ;;  %v905_v2 = vld [vmem:[%s1197_s2 + $0x74] sm:$0xf] }
   0xc   : > { %v801_v3 = vor.u32 %v906_v1, %v800_v0  ;;  %v802_v4 = vld [vmem:[%s1197_s2 + $0x78] sm:$0xf0]  ;;  %v864_v5 = vld [vmem:[%s1196_s1 + $0x70] sm:$0xf]  ;;  %v890_v6 = vld [vmem:[%s1196_s1 + $0x74] sm:$0xf0] }
   0xd   : > { %v805_v7 = vor.u32 %v905_v2, %v802_v4  ;;  %v865_v8 = vor.u32 %v890_v6, %v864_v5  ;;  %v889_v9 = vld [vmem:[%s1196_s1 + $0x74] sm:$0xf]  ;;  %v866_v10 = vld [vmem:[%s1196_s1 + $0x78] sm:$0xf0]  ;;  %v792_v11 = vld [vmem:[%s1197_s2 + $0x60] sm:$0xf] }
   0xe   : > { %445 = vmatpush.bf16.msra.mxu0 %v801_v3  ;;  %v869_v12 = vor.u32 %v889_v9, %v866_v10  ;;  %v904_v13 = vld [vmem:[%s1197_s2 + $0x64] sm:$0xf0]  ;;  %v903_v14 = vld [vmem:[%s1197_s2 + $0x64] sm:$0xf]  ;;  %v794_v15 = vld [vmem:[%s1197_s2 + $0x68] sm:$0xf0] }
   0xf   : > { %458 = vmatpush.bf16.msra.mxu1 %v805_v7  ;;  %551 = vmatpush.bf16.msra.mxu2 %v865_v8  ;;  %v793_v16 = vor.u32 %v904_v13, %v792_v11  ;;  %v797_v17 = vor.u32 %v903_v14, %v794_v15  ;;  %v856_v18 = vld [vmem:[%s1196_s1 + $0x60] sm:$0xf]  ;;  %v888_v19 = vld [vmem:[%s1196_s1 + $0x64] sm:$0xf0]  ;;  %v887_v20 = vld [vmem:[%s1196_s1 + $0x64] sm:$0xf] }
  0x10   : > { %564 = vmatpush.bf16.msra.mxu3 %v869_v12  ;;  %v857_v21 = vor.u32 %v888_v19, %v856_v18  ;;  %v858_v22 = vld [vmem:[%s1196_s1 + $0x68] sm:$0xf0]  ;;  %v784_v23 = vld [vmem:[%s1197_s2 + $0x50] sm:$0xf]  ;;  %v902_v24 = vld [vmem:[%s1197_s2 + $0x54] sm:$0xf0] }
  0x11   : > { %v861_v25 = vor.u32 %v887_v20, %v858_v22  ;;  %v901_v26 = vld [vmem:[%s1197_s2 + $0x54] sm:$0xf]  ;;  %v786_v27 = vld [vmem:[%s1197_s2 + $0x58] sm:$0xf0]  ;;  %v848_v28 = vld [vmem:[%s1196_s1 + $0x50] sm:$0xf]  ;;  %v785_v29 = vor.u32 %v902_v24, %v784_v23 }
  0x12   : > { %446 = vmatpush.bf16.msra.mxu0 %v793_v16  ;;  %v886_v30 = vld [vmem:[%s1196_s1 + $0x54] sm:$0xf0]  ;;  %v885_v31 = vld [vmem:[%s1196_s1 + $0x54] sm:$0xf]  ;;  %v850_v32 = vld [vmem:[%s1196_s1 + $0x58] sm:$0xf0]  ;;  %v789_v33 = vor.u32 %v901_v26, %v786_v27 }
  0x13   : > { %459 = vmatpush.bf16.msra.mxu1 %v797_v17  ;;  %552 = vmatpush.bf16.msra.mxu2 %v857_v21  ;;  %v849_v34 = vor.u32 %v886_v30, %v848_v28  ;;  %v776_v35 = vld [vmem:[%s1197_s2 + $0x40] sm:$0xf]  ;;  %v900_v36 = vld [vmem:[%s1197_s2 + $0x44] sm:$0xf0]  ;;  %v899_v37 = vld [vmem:[%s1197_s2 + $0x44] sm:$0xf]  ;;  %v853_v38 = vor.u32 %v885_v31, %v850_v32 }
  0x14   : > { %565 = vmatpush.bf16.msra.mxu3 %v861_v25  ;;  %v778_v39 = vld [vmem:[%s1197_s2 + $0x48] sm:$0xf0]  ;;  %v840_v40 = vld [vmem:[%s1196_s1 + $0x40] sm:$0xf]  ;;  %v884_v41 = vld [vmem:[%s1196_s1 + $0x44] sm:$0xf0]  ;;  %v777_v44 = vor.u32 %v900_v36, %v776_v35 }
  0x15   : > { %v883_v42 = vld [vmem:[%s1196_s1 + $0x44] sm:$0xf]  ;;  %v842_v43 = vld [vmem:[%s1196_s1 + $0x48] sm:$0xf0]  ;;  %v781_v45 = vor.u32 %v899_v37, %v778_v39  ;;  %v841_v46 = vor.u32 %v884_v41, %v840_v40  ;;  %v768_v47 = vld [vmem:[%s1197_s2 + $0x30] sm:$0xf] }
  0x16   : > { %447 = vmatpush.bf16.msra.mxu0 %v785_v29  ;;  %v898_v48 = vld [vmem:[%s1197_s2 + $0x34] sm:$0xf0]  ;;  %v897_v49 = vld [vmem:[%s1197_s2 + $0x34] sm:$0xf]  ;;  %v845_v50 = vor.u32 %v883_v42, %v842_v43  ;;  %v770_v51 = vld [vmem:[%s1197_s2 + $0x38] sm:$0xf0] }
  0x17   : > { %460 = vmatpush.bf16.msra.mxu1 %v789_v33  ;;  %553 = vmatpush.bf16.msra.mxu2 %v849_v34  ;;  %v832_v52 = vld [vmem:[%s1196_s1 + $0x30] sm:$0xf]  ;;  %v882_v53 = vld [vmem:[%s1196_s1 + $0x34] sm:$0xf0]  ;;  %v881_v54 = vld [vmem:[%s1196_s1 + $0x34] sm:$0xf]  ;;  %v769_v56 = vor.u32 %v898_v48, %v768_v47  ;;  %v773_v57 = vor.u32 %v897_v49, %v770_v51 }
  0x18   : > { %566 = vmatpush.bf16.msra.mxu3 %v853_v38  ;;  %v834_v55 = vld [vmem:[%s1196_s1 + $0x38] sm:$0xf0]  ;;  %v833_v58 = vor.u32 %v882_v53, %v832_v52  ;;  %v760_v59 = vld [vmem:[%s1197_s2 + $0x20] sm:$0xf]  ;;  %v896_v60 = vld [vmem:[%s1197_s2 + $0x24] sm:$0xf0] }
  0x19   : > { %v895_v61 = vld [vmem:[%s1197_s2 + $0x24] sm:$0xf]  ;;  %v837_v62 = vor.u32 %v881_v54, %v834_v55  ;;  %v762_v63 = vld [vmem:[%s1197_s2 + $0x28] sm:$0xf0]  ;;  %v824_v0 = vld [vmem:[%s1196_s1 + $0x20] sm:$0xf]  ;;  %v761_v4 = vor.u32 %v896_v60, %v760_v59 }
  0x1a   : > { %448 = vmatpush.bf16.msra.mxu0 %v777_v44  ;;  %v880_v1 = vld [vmem:[%s1196_s1 + $0x24] sm:$0xf0]  ;;  %v879_v2 = vld [vmem:[%s1196_s1 + $0x24] sm:$0xf]  ;;  %v826_v3 = vld [vmem:[%s1196_s1 + $0x28] sm:$0xf0]  ;;  %v765_v7 = vor.u32 %v895_v61, %v762_v63 }
  0x1b   : > { %461 = vmatpush.bf16.msra.mxu1 %v781_v45  ;;  %554 = vmatpush.bf16.msra.mxu2 %v841_v46  ;;  %v752_v5 = vld [vmem:[%s1197_s2 + $0x10] sm:$0xf]  ;;  %v894_v6 = vld [vmem:[%s1197_s2 + $0x14] sm:$0xf0]  ;;  %v825_v8 = vor.u32 %v880_v1, %v824_v0  ;;  %v893_v9 = vld [vmem:[%s1197_s2 + $0x14] sm:$0xf]  ;;  %v829_v12 = vor.u32 %v879_v2, %v826_v3 }
  0x1c   : > { %567 = vmatpush.bf16.msra.mxu3 %v845_v50  ;;  %v754_v10 = vld [vmem:[%s1197_s2 + $0x18] sm:$0xf0]  ;;  %v816_v11 = vld [vmem:[%s1196_s1 + $0x10] sm:$0xf]  ;;  %v878_v13 = vld [vmem:[%s1196_s1 + $0x14] sm:$0xf0]  ;;  %v753_v16 = vor.u32 %v894_v6, %v752_v5 }
  0x1d   : > { %v877_v14 = vld [vmem:[%s1196_s1 + $0x14] sm:$0xf]  ;;  %v818_v15 = vld [vmem:[%s1196_s1 + $0x18] sm:$0xf0]  ;;  %v744_v17 = vld [vmem:[%s1197_s2] sm:$0xf]  ;;  %v757_v18 = vor.u32 %v893_v9, %v754_v10  ;;  %v817_v19 = vor.u32 %v878_v13, %v816_v11 }
  0x1e   : > { %449 = vmatpush.bf16.msra.mxu0 %v769_v56  ;;  %s1204_s25 = smov (!%p282_p3, %s730_s25), 1  ;;  %v892_v20 = vld [vmem:[%s1197_s2 + $0x4] sm:$0xf0]  ;;  %v891_v21 = vld [vmem:[%s1197_s2 + $0x4] sm:$0xf]  ;;  %v821_v23 = vor.u32 %v877_v14, %v818_v15  ;;  %vm345_vm1 = vcmask 1043456  }
  0x1f   : > { %462 = vmatpush.bf16.msra.mxu1 %v773_v57  ;;  %555 = vmatpush.bf16.msra.mxu2 %v833_v58  ;;  %v746_v22 = vld [vmem:[%s1197_s2 + $0x8] sm:$0xf0]  ;;  %v808_v24 = vld [vmem:[%s1196_s1] sm:$0xf]  ;;  %v876_v25 = vld [vmem:[%s1196_s1 + $0x4] sm:$0xf0]  ;;  %v745_v29 = vor.u32 %v892_v20, %v744_v17 }
  0x20   : > { %568 = vmatpush.bf16.msra.mxu3 %v837_v62  ;;  %s735_s22 = sshll.u32 %s1204_s25, 2  ;;  %v875_v26 = vld [vmem:[%s1196_s1 + $0x4] sm:$0xf]  ;;  %v810_v27 = vld [vmem:[%s1196_s1 + $0x8] sm:$0xf0]  ;;  %v749_v31 = vor.u32 %v891_v21, %v746_v22  ;;  %v809_v32 = vor.u32 %v876_v25, %v808_v24  ;;  %s872_s13 = sshll.u32 %s1204_s25, 3 }
  0x21   : > { %s285_s8 = scalar_lea.vmem %s1195_s0, %s735_s22  ;;  %v915_v28 = vld [vmem:[%s1198_s3] ss:$0 sm:$0xff]  ;;  %v813_v35 = vor.u32 %v875_v26, %v810_v27  ;;  %vm346_vm2 = vsmask.f32 3328  ;;  %s290_s16 = scalar_lea.vmem %s1200_s5, %s872_s13 }
  0x22   : > { %450 = vmatpush.bf16.msra.mxu0 %v761_v4  ;;  %v302_v30 = vld [vmem:[%s285_s8] sm:$0xf]  ;;  %vm347_vm3 = vmand %vm345_vm1, %vm346_vm2  ;;  %s873_s17 = sshll.u32 %s1204_s25, 4 }
  0x23   : > { %463 = vmatpush.bf16.msra.mxu1 %v765_v7  ;;  %556 = vmatpush.bf16.msra.mxu2 %v825_v8  ;;  %v303_v33 = vunpack.c.l.bf16 %v302_v30  ;;  %v916_v34 = vld [vmem:[%s1199_s4] ss:$0 sm:$0xff]  ;;  %s295_s20 = scalar_lea.vmem %s1201_s6, %s873_s17  ;;  %s300_s23 = scalar_lea.vmem %s1202_s7, %s873_s17 }
  0x24   : > { %569 = vmatpush.bf16.msra.mxu3 %v829_v12 }
  0x25   : > { %v308_v36 = vmul.f32 %v915_v28, %v303_v33 }
  0x26   : > { %451 = vmatpush.bf16.msra.mxu0 %v753_v16 }
  0x27   : > { %464 = vmatpush.bf16.msra.mxu1 %v757_v18  ;;  %557 = vmatpush.bf16.msra.mxu2 %v817_v19  ;;  %v313_v37 = vadd.f32 %v916_v34, %v308_v36 }
  0x28   : > { %570 = vmatpush.bf16.msra.mxu3 %v821_v23 }
  0x29   : > { %vm314_vm0 = vcmp.ge.f32.partialorder %v313_v37, 0.0  ;;  %v315_v38 = vmul.f32 0.01, %v313_v37 }
  0x2a   : > { %452 = vmatpush.bf16.msra.mxu0 %v745_v29 }
  0x2b   : > { %465 = vmatpush.bf16.msra.mxu1 %v749_v31  ;;  %558 = vmatpush.bf16.msra.mxu2 %v809_v32  ;;  %v316_v39 = vsel %vm314_vm0, %v313_v37, %v315_v38 }
  0x2c   : > { %571 = vmatpush.bf16.msra.mxu3 %v813_v35  ;;  %v317_v40 = vpack.c.bf16 %v316_v39, %v316_v39 }
  0x2e   : > { %v335_v41 = vunpack.c.l.b16 %v317_v40  ;;  %559 = vmatmul.bf16.vlgmr.msra.gmra.mxu2 %v317_v40 }
  0x2f   : > { %572 = vmatmul.bf16.vlgmr.msra.gmra.mxu3 %v317_v40 }
  0x30   : > { %v336_v42 = vpack.c.b16 %v335_v41, %v335_v41 }
  0x32   : > { %v338_v43 = vshrl.u32 %v336_v42, 16  ;;  %v340_v44 = vshll.u32 %v336_v42, 16 }
  0x34   : > { %v342_v45 = vrot.slane %v340_v44, 1 }
  0x36   : > { %v343_v46 = vor.u32 %v342_v45, %v338_v43 }
  0x38   : > { %v348_v47 = vsel %vm347_vm3, %v343_v46, 0 }
  0x39   : > { %453 = vmatmul.bf16.vlgmr.msra.gmra.mxu0 %v348_v47  ;;  %466 = vmatmul.bf16.vlgmr.msra.gmra.mxu1 %v348_v47 }
  0xb1   : > { %v560_v48 = vpop.f32.mrf.mxu2 }
  0xb2   : > { %v573_v49 = vpop.f32.mrf.mxu3 }
  0xb6   : > { %v454_v50 = vpop.f32.mrf.mxu0  ;;  %v467_v51 = vpop.f32.mrf.mxu1 }
  0xb7   : > { %v561_v52 = vadd.f32 %v560_v48, %v454_v50  ;;  %v574_v53 = vadd.f32 %v573_v49, %v467_v51 }
  0xb9   : > { %v579_v54 = vrot.slane %v561_v52, 4  ;;  %v593_v55 = vmul.f32 %v561_v52, %v561_v52  ;;  %v577_v56 = vpack.c.bf16 %v574_v53, %v561_v52  ;;  %v585_v57 = vrot.slane %v574_v53, 4  ;;  %v562_v58 = vpop.f32.mrf.mxu2 }
  0xba   : > { %v575_v59 = vpop.f32.mrf.mxu3  ;;  %v594_v60 = vmul.f32 %v574_v53, %v574_v53 }
  0xbb   : > { %v580_v61 = vadd.f32 %v579_v54, %v561_v52  ;;  %v595_v62 = vrot.slane %v593_v55, 4  ;;  %578 = vst [vmem:[%s290_s16] sm:$0xff] %v577_v56  ;;  %v586_v63 = vadd.f32 %v585_v57, %v574_v53 }
  0xbc   : > { %v601_v0 = vrot.slane %v594_v60, 4 }
  0xbd   : > { %v581_v1 = vrot.slane %v580_v61, 2  ;;  %v596_v2 = vadd.f32 %v595_v62, %v593_v55  ;;  %v587_v3 = vrot.slane %v586_v63, 2 }
  0xbe   : > { %v602_v4 = vadd.f32 %v601_v0, %v594_v60  ;;  %v456_v5 = vpop.f32.mrf.mxu0  ;;  %v469_v6 = vpop.f32.mrf.mxu1 }
  0xbf   : > { %v582_v7 = vadd.f32 %v581_v1, %v580_v61  ;;  %v597_v8 = vrot.slane %v596_v2, 2  ;;  %v588_v9 = vadd.f32 %v587_v3, %v586_v63 }
  0xc0   : > { %v603_v10 = vrot.slane %v602_v4, 2 }
  0xc1   : > { %v583_v11 = vrot.slane %v582_v7, 1  ;;  %v598_v12 = vadd.f32 %v597_v8, %v596_v2  ;;  %v589_v13 = vrot.slane %v588_v9, 1 }
  0xc2   : > { %v604_v14 = vadd.f32 %v603_v10, %v602_v4 }
  0xc3   : > { %v584_v15 = vadd.f32 %v583_v11, %v582_v7  ;;  %v599_v16 = vrot.slane %v598_v12, 1  ;;  %v590_v17 = vadd.f32 %v589_v13, %v588_v9 }
  0xc4   : > { %v605_v18 = vrot.slane %v604_v14, 1 }
  0xc5   : > { %591 = vst [vmem:[%s295_s20] sm:$0xff] %v584_v15  ;;  %v600_v19 = vadd.f32 %v599_v16, %v598_v12 }
  0xc6   : > { %592 = vst [vmem:[%s295_s20 + $0x8] sm:$0xff] %v590_v17  ;;  %v606_v20 = vadd.f32 %v605_v18, %v604_v14 }
  0xc7   : > { %607 = vst [vmem:[%s300_s23] sm:$0xff] %v600_v19 }
  0xc8   : > { %608 = vst [vmem:[%s300_s23 + $0x8] sm:$0xff] %v606_v20 }
  0xc9 PF: > { %s18_s24 = sadd.s32 1, %s923_s24  }
  0xca   : > { %p15_p4 = scmp.ge.s32.totalorder %s18_s24, 4  }
  0xcc   :  { %17 = sbr.rel (!%p15_p4) target bundleno = 1 (0x1), region = 94 }

// kernel: _lambda_.17
= control target key start
LH: loop header
LB: loop body
LE: loop exit
PB: predicated region body
PF: predicated region fallthrough
CT: control target
= control target key end

     0   :  { %s833_s24 = smov 0   ;;  %s935_s0 = inlined_call_operand.vmem [shape: bf16[2,16,128], index: 0, kind: input, shape index: {}]   ;;  %s936_s1 = inlined_call_operand.vmem [shape: bf16[128,4], index: 1, kind: input, shape index: {}]   ;;  %s937_s2 = inlined_call_operand.vmem [shape: bf16[128,4], index: 2, kind: input, shape index: {}]   ;;  %s938_s3 = inlined_call_operand.vmem [shape: bf16[128,4], index: 3, kind: input, shape index: {}]   ;;  %s939_s4 = inlined_call_operand.vmem [shape: f32[1,128], index: 4, kind: input, shape index: {}]   ;;  %s940_s5 = inlined_call_operand.vmem [shape: f32[1,128], index: 5, kind: input, shape index: {}]   ;;  %s941_s6 = inlined_call_operand.vmem [shape: f32[1,4], index: 6, kind: input, shape index: {}]   ;;  %s942_s7 = inlined_call_operand.vmem [shape: f32[2,16,4], index: 7, kind: output, shape index: {}]  }
   0x1 LB: > { %s633_s25 = sadd.s32 4294967295, %s791_s24   ;;  %p637_p0 = scmp.ge.s32.totalorder %s791_s24, 1  ;;  %s791_s24 = sphi %s833_s24, %s17_s24  }
   0x2   : > { %p237_p1 = scmp.lt.s32.totalorder %s791_s24, 3 }
   0x4   : > { %p238_p2 = pnand %p637_p0, %p237_p1 }
   0x5   : > { %p269_p3 = scmp.lt.s32.totalorder (!%p238_p2), %s633_s25, 1 }
   0x6   : > { %241 = sbr.rel (%p238_p2) target bundleno = 199 (0xc7), region = 48 }
   0xb   : > { %v757_v0 = vld [vmem:[%s937_s2 + $0x38] sm:$0xff]  ;;  %v756_v3 = vld [vmem:[%s937_s2 + $0x30] sm:$0xff]  ;;  %s944_s25 = smov (!%p269_p3, %s633_s25), 1  ;;  %v755_v6 = vld [vmem:[%s937_s2 + $0x28] sm:$0xff]  ;;  %vm333_vm2 = vcmask 1040384   ;;  %vm481_vm4 = vcmask 1047552  }
   0xc   : > { %v749_v1 = vld [vmem:[%s936_s1 + $0x38] sm:$0xff]  ;;  %401 = vmatpush.bf16.msra.mxu0 %v757_v0  ;;  %v748_v4 = vld [vmem:[%s936_s1 + $0x30] sm:$0xff]  ;;  %s740_s15 = sshll.u32 %s944_s25, 3  ;;  %v747_v7 = vld [vmem:[%s936_s1 + $0x28] sm:$0xff]  ;;  %vm334_vm3 = vsmask.f32 256 }
   0xd   : > { %v765_v2 = vld [vmem:[%s938_s3 + $0x38] sm:$0xff]  ;;  %464 = vmatpush.bf16.msra.mxu1 %v749_v1  ;;  %v764_v5 = vld [vmem:[%s938_s3 + $0x30] sm:$0xff]  ;;  %s273_s18 = scalar_lea.vmem %s935_s0, %s740_s15  ;;  %v763_v8 = vld [vmem:[%s938_s3 + $0x28] sm:$0xff]  ;;  %vm482_vm5 = vsmask.f32 7424  ;;  %s741_s19 = sshll.u32 %s944_s25, 4 }
   0xe   : > { %549 = vmatpush.bf16.msra.mxu2 %v765_v2  ;;  %v767_v9 = vld [vmem:[%s273_s18] sm:$0xff]   ;;  %v753_v21 = vld [vmem:[%s937_s2 + $0x18] sm:$0xff]  ;;  %v752_v28 = vld [vmem:[%s937_s2 + $0x10] sm:$0xff]  ;;  %s278_s22 = scalar_lea.vmem %s942_s7, %s741_s19  ;;  %vm575_vm8 = vcmask 31744  }
   0xf   : > { %v778_v10 = vld [vmem:[%s939_s4] ss:$0 sm:$0xff]  ;;  %v768_v11 = vunpack.c.l.bf16 %v767_v9  ;;  %v769_v12 = vunpack.c.h.bf16 %v767_v9  ;;  %v745_v22 = vld [vmem:[%s936_s1 + $0x18] sm:$0xff]  ;;  %v744_v29 = vld [vmem:[%s936_s1 + $0x10] sm:$0xff] }
  0x10   : > { %402 = vmatpush.bf16.msra.mxu0 %v756_v3  ;;  %v779_v13 = vld [vmem:[%s940_s5] ss:$0 sm:$0xff]  ;;  %v761_v23 = vld [vmem:[%s938_s3 + $0x18] sm:$0xff]  ;;  %v760_v32 = vld [vmem:[%s938_s3 + $0x10] sm:$0xff] }
  0x11   : > { %465 = vmatpush.bf16.msra.mxu1 %v748_v4  ;;  %v754_v14 = vld [vmem:[%s937_s2 + $0x20] sm:$0xff]  ;;  %v288_v17 = vmul.f32 %v778_v10, %v768_v11  ;;  %v289_v18 = vmul.f32 %v778_v10, %v769_v12  ;;  %v751_v35 = vld [vmem:[%s937_s2 + $0x8] sm:$0xff]  ;;  %vm335_vm6 = vmand %vm333_vm2, %vm334_vm3 }
  0x12   : > { %550 = vmatpush.bf16.msra.mxu2 %v764_v5  ;;  %v746_v15 = vld [vmem:[%s936_s1 + $0x20] sm:$0xff]  ;;  %v743_v36 = vld [vmem:[%s936_s1 + $0x8] sm:$0xff]  ;;  %vm483_vm7 = vmand %vm481_vm4, %vm482_vm5 }
  0x13   : > { %v762_v16 = vld [vmem:[%s938_s3 + $0x20] sm:$0xff]  ;;  %v294_v19 = vadd.f32 %v779_v13, %v288_v17  ;;  %v295_v20 = vadd.f32 %v779_v13, %v289_v18  ;;  %v759_v38 = vld [vmem:[%s938_s3 + $0x8] sm:$0xff] }
  0x14   : > { %403 = vmatpush.bf16.msra.mxu0 %v755_v6  ;;  %v750_v41 = vld [vmem:[%s937_s2] sm:$0xff] }
  0x15   : > { %466 = vmatpush.bf16.msra.mxu1 %v747_v7  ;;  %vm296_vm0 = vcmp.ge.f32.partialorder %v294_v19, 0.0  ;;  %vm297_vm1 = vcmp.ge.f32.partialorder %v295_v20, 0.0  ;;  %v298_v24 = vmul.f32 0.01, %v294_v19  ;;  %v299_v25 = vmul.f32 0.01, %v295_v20 }
  0x16   : > { %551 = vmatpush.bf16.msra.mxu2 %v763_v8  ;;  %v742_v42 = vld [vmem:[%s936_s1] sm:$0xff] }
  0x17   : > { %v300_v26 = vsel %vm296_vm0, %v294_v19, %v298_v24  ;;  %v301_v27 = vsel %vm297_vm1, %v295_v20, %v299_v25  ;;  %v758_v45 = vld [vmem:[%s938_s3] sm:$0xff] }
  0x18   : > { %404 = vmatpush.bf16.msra.mxu0 %v754_v14  ;;  %v302_v30 = vpack.c.bf16 %v300_v26, %v300_v26  ;;  %v303_v31 = vpack.c.bf16 %v301_v27, %v301_v27  ;;  %v780_v53 = vld [vmem:[%s941_s6] ss:$0 sm:$0xff] }
  0x19   : > { %467 = vmatpush.bf16.msra.mxu1 %v746_v15 }
  0x1a   : > { %552 = vmatpush.bf16.msra.mxu2 %v762_v16  ;;  %v322_v33 = vunpack.c.l.b16 %v302_v30  ;;  %v323_v34 = vunpack.c.l.b16 %v303_v31 }
  0x1c   : > { %405 = vmatpush.bf16.msra.mxu0 %v753_v21  ;;  %v324_v37 = vpack.c.b16 %v323_v34, %v322_v33 }
  0x1d   : > { %468 = vmatpush.bf16.msra.mxu1 %v745_v22 }
  0x1e   : > { %553 = vmatpush.bf16.msra.mxu2 %v761_v23  ;;  %v326_v39 = vshrl.u32 %v324_v37, 16  ;;  %v329_v40 = vshll.u32 %v324_v37, 16 }
  0x20   : > { %406 = vmatpush.bf16.msra.mxu0 %v752_v28  ;;  %v328_v43 = vrot.slane %v326_v39, 7  ;;  %v478_v44 = vrot.slane %v329_v40, 1 }
  0x21   : > { %469 = vmatpush.bf16.msra.mxu1 %v744_v29 }
  0x22   : > { %554 = vmatpush.bf16.msra.mxu2 %v760_v32  ;;  %v331_v46 = vor.u32 %v329_v40, %v328_v43  ;;  %v479_v47 = vor.u32 %v478_v44, %v326_v39 }
  0x24   : > { %407 = vmatpush.bf16.msra.mxu0 %v751_v35  ;;  %v336_v48 = vsel %vm335_vm6, 0, %v331_v46  ;;  %v484_v49 = vsel %vm483_vm7, %v479_v47, 0 }
  0x25   : > { %470 = vmatpush.bf16.msra.mxu1 %v743_v36 }
  0x26   : > { %555 = vmatpush.bf16.msra.mxu2 %v759_v38 }
  0x28   : > { %408 = vmatpush.bf16.msra.mxu0 %v750_v41 }
  0x29   : > { %471 = vmatpush.bf16.msra.mxu1 %v742_v42 }
  0x2a   : > { %556 = vmatpush.bf16.msra.mxu2 %v758_v45 }
  0x2b   : > { %409 = vmatmul.bf16.vlgmr.msra.gmra.mxu0 %v336_v48 }
  0x2c   : > { %472 = vmatmul.bf16.vlgmr.msra.gmra.mxu1 %v324_v37 }
  0x2d   : > { %557 = vmatmul.bf16.vlgmr.msra.gmra.mxu2 %v484_v49 }
  0xa8   : > { %v410_v50 = vpop.f32.mrf.mxu0 }
  0xa9   : > { %v473_v51 = vpop.f32.mrf.mxu1 }
  0xaa   : > { %v474_v52 = vadd.f32 %v473_v51, %v410_v50 }
  0xb0   : > { %v558_v54 = vpop.f32.mrf.mxu2  ;;  %v412_v57 = vpop.f32.mrf.mxu0 }
  0xb1   : > { %v563_v55 = vadd.f32 %v558_v54, %v474_v52  ;;  %v475_v58 = vpop.f32.mrf.mxu1 }
  0xb2   : > { %v476_v59 = vadd.f32 %v475_v58, %v412_v57 }
  0xb3   : > { %v569_v56 = vadd.f32 %v780_v53, %v563_v55 }
  0xb5   : > { %781 = vtanh.f32 %v569_v56 }
  0xb8   : > { %v560_v60 = vpop.f32.mrf.mxu2 }
  0xb9   : > { %v564_v61 = vadd.f32 %v560_v60, %v476_v59 }
  0xbb   : > { %v782_v62 = vpop.eup %781  ;;  %v570_v63 = vadd.f32 %v780_v53, %v564_v61 }
  0xbc   : > { %v573_v0 = vmul.f32 2.0, %v782_v62 }
  0xbd   : > { %783 = vtanh.f32 %v570_v63 }
  0xbe   : > { %576 = vst.msk [vmem:[%s278_s22] sm:$0xff] %vm575_vm8, %v573_v0 }
  0xc3   : > { %v784_v1 = vpop.eup %783 }
  0xc4   : > { %v574_v2 = vmul.f32 2.0, %v784_v1 }
  0xc6   : > { %577 = vst.msk [vmem:[%s278_s22 + $0x8] sm:$0xff] %vm575_vm8, %v574_v2 }
  0xc7 PF: > { %s17_s24 = sadd.s32 1, %s791_s24  }
  0xc8   : > { %p14_p4 = scmp.ge.s32.totalorder %s17_s24, 4  }
  0xca   :  { %16 = sbr.rel (!%p14_p4) target bundleno = 1 (0x1), region = 78 }

</bundles_post_ra>
